<compile_context>
chip_gen: v7x
topology: tpu7x:2x2x1
jax: 0.10.0
libtpu: 0.0.40
codegen_flags: <defaults>
</compile_context>

<pallas_src>
import functools

import jax
import jax.numpy as jnp
from jax.experimental import pallas as pl
from jax.experimental.pallas import tpu as pltpu

_LANE = 128                     # lanes of a vreg tile
# Below this element count the XLA-fused expression is already at HBM roofline
# and pallas_call launch/DMA-descriptor setup dominates.
# TODO(synk): benchmark-tune this cutoff per generation (256K-1M range).
_MIN_PALLAS_SIZE = 512 * 1024


def _round_up(x, m):
    return ((x + m - 1) // m) * m


@functools.lru_cache(maxsize=1)
def _chip_config():
    """Per-generation tiling knobs: block bytes / VMEM budget / core split / buffering."""
    kind = ""
    try:
        kind = jax.devices()[0].device_kind.lower()
    except Exception:  # pragma: no cover - non-TPU backends
        pass
    if "v5" in kind:
        # v5e: 16 MiB scoped-VMEM default. 2 MiB blocks -> <= 8 MiB resident
        # (in+out, double-buffered); raise the limit explicitly for headroom.
        return {"block_bytes": 2 << 20, "vmem_limit": 32 << 20,
                "dim_sem": "arbitrary", "in_buffers": None, "target_steps": 4}
    if "v7" in kind or "7x" in kind:
        # v7x: 64 MiB physical VMEM, 2 TensorCores, 3.2 TB/s HBM. Keep the
        # resident footprint <= ~16 MiB, split the grid across both cores
        # (only CORE_PARALLEL actually does that), buffer the input deeper.
        return {"block_bytes": 2 << 20, "vmem_limit": 32 << 20,
                "dim_sem": getattr(pltpu, "CORE_PARALLEL", "arbitrary"),
                "in_buffers": 3, "target_steps": 8}
    # v6e / v4 (default): 32 MiB scoped default, 128 MiB physical -> 4 MiB blocks
    # (~16 MiB resident double-buffered) amortize the ~0.35 us per-step cost.
    return {"block_bytes": 4 << 20, "vmem_limit": 64 << 20,
            "dim_sem": "arbitrary", "in_buffers": None, "target_steps": 4}


def _ve_sigma_kernel(t_ref, sigma_ref, *, log_min, log_span):
    # Compute in f32 regardless of the I/O dtype (v5e VPU/EUP have no bf16).
    t = t_ref[...].astype(jnp.float32)
    # sigma_t = exp(log_min + t * (log_max - log_min)): one VPU FMA + one EUP exp.
    # (Out-of-bounds lanes of a ragged last block may hold garbage -> exp can be
    #  inf there, but those lanes are masked on store.)
    sigma_ref[...] = jnp.exp(log_min + t * log_span).astype(sigma_ref.dtype)


def ve_schedule(t, sigma_min=0.001, sigma_max=1000.0,
                *, min_pallas_size=_MIN_PALLAS_SIZE):
    """Pallas implementation of VESchedule.forward.

    Args:
        t: array of arbitrary shape (*). Floating dtypes are preserved;
           non-floating inputs are promoted to float32 (documented deviation
           from torch.ones_like for integer t).
    Returns:
        (alpha_t, sigma_t), each with the same shape as t.
    """
    orig_shape = t.shape
    dtype = t.dtype if jnp.issubdtype(t.dtype, jnp.floating) else jnp.float32
    itemsize = jnp.dtype(dtype).itemsize
    # Full sublane packing per dtype: f32 -> 8, bf16/f16 -> 16, 8-bit -> 32.
    sub = {4: 8, 2: 16, 1: 32}.get(itemsize, 8)

    log_min = float(jnp.log(jnp.float32(sigma_min)))
    log_max = float(jnp.log(jnp.float32(sigma_max)))
    log_span = log_max - log_min

    # alpha_t = 1 everywhere: lazy broadcast, no HBM fill pass, no extra launch.
    alpha = jnp.broadcast_to(jnp.ones((), dtype), orig_shape)

    n = t.size
    n_main = (n // sub) * sub     # sublane-aligned prefix handled by Pallas

    if n == 0 or n < min_pallas_size or n_main == 0:
        # Tiny/mid inputs (typical schedule usage): let XLA fuse the two-op
        # elementwise expression; it is already at roofline there.
        tf = t.astype(jnp.float32)
        sigma = jnp.exp(log_min + tf * log_span).astype(dtype)
        return alpha, sigma

    cfg = _chip_config()

    t_flat = jnp.ravel(t).astype(dtype)     # keep original dtype; cast in-kernel

    # Lane-dense (sub, W) view of the aligned prefix. W need NOT be a multiple
    # of 128: the ragged last lane-block is masked by Pallas, so there is no
    # pad-to-tile copy of the whole array.
    W = n_main // sub
    t2d = (t_flat if n_main == n else t_flat[:n_main]).reshape(sub, W)

    # Block width: <= cfg["block_bytes"] per array per block, but keep at least
    # ~target_steps grid steps so input/output DMA overlaps with compute.
    bw_max = max(_LANE, (cfg["block_bytes"] // (sub * itemsize)) // _LANE * _LANE)
    if W < _LANE:
        bw = W                                             # full (tiny) dim
    else:
        bw = min(bw_max, _round_up(pl.cdiv(W, cfg["target_steps"]), _LANE))
    grid = (pl.cdiv(W, bw),)

    kernel = functools.partial(_ve_sigma_kernel,
                               log_min=log_min, log_span=log_span)

    if cfg["in_buffers"] is None:
        in_spec = pl.BlockSpec((sub, bw), lambda i: (0, i))
    else:
        in_spec = pl.BlockSpec((sub, bw), lambda i: (0, i),
                               pipeline_mode=pl.Buffered(cfg["in_buffers"]))

    sigma2d = pl.pallas_call(
        kernel,
        out_shape=jax.ShapeDtypeStruct((sub, W), dtype),
        grid_spec=pltpu.PrefetchScalarGridSpec(
            num_scalar_prefetch=0,
            grid=grid,
            in_specs=[in_spec],
            out_specs=pl.BlockSpec((sub, bw), lambda i: (0, i)),
        ),
        compiler_params=pltpu.CompilerParams(
            dimension_semantics=(cfg["dim_sem"],),
            vmem_limit_bytes=cfg["vmem_limit"],
        ),
        cost_estimate=pl.CostEstimate(
            flops=2 * n_main,
            transcendentals=n_main,
            bytes_accessed=2 * n_main * itemsize,
        ),
    )(t2d)

    if n_main == n:
        sigma = sigma2d.reshape(orig_shape)
    else:
        # (< sub)-element tail: pure JAX, then a single concat (no full-array
        # pad / slice round trips).
        t_tail = t_flat[n_main:].astype(jnp.float32)
        sigma_tail = jnp.exp(log_min + t_tail * log_span).astype(dtype)
        sigma = jnp.concatenate([sigma2d.reshape(-1), sigma_tail]).reshape(orig_shape)
    return alpha, sigma


def _ve_schedule_ref(t, sigma_min=0.001, sigma_max=1000.0):
    tf = t.astype(jnp.float32)
    log_min = jnp.log(jnp.float32(sigma_min))
    log_max = jnp.log(jnp.float32(sigma_max))
    alpha = jnp.ones_like(t)
    sigma = jnp.exp((1.0 - tf) * log_min + tf * log_max).astype(t.dtype)
    return alpha, sigma


if __name__ == "__main__":
    key = jax.random.PRNGKey(0)
    k0, k1, k2 = jax.random.split(key, 3)

    # 1) Typical tiny schedule input -> pure-JAX fast path.
    t_small = jax.random.uniform(k0, (2, 16), dtype=jnp.float32)
    a_s, s_s = ve_schedule(t_small)

    # 2) Larger aligned f32 input -> Pallas kernel (lane-dense (8, W) view).
    t_big = jax.random.uniform(k1, (256, 4096), dtype=jnp.float32)
    a_b, s_b = ve_schedule(t_big)

    # 3) Unaligned bf16 input -> Pallas kernel with (16, W) packing, ragged
    #    masked last block and pure-JAX tail (threshold lowered to force the
    #    Pallas path for coverage).
    t_bf = jax.random.uniform(k2, (5, 7001), dtype=jnp.float32).astype(jnp.bfloat16)
    a_f, s_f = ve_schedule(t_bf, min_pallas_size=1024)

    jax.block_until_ready((a_s, s_s, a_b, s_b, a_f, s_f))

    # Checks against the pure-JAX reference.
    a_s_ref, s_s_ref = _ve_schedule_ref(t_small)
    a_b_ref, s_b_ref = _ve_schedule_ref(t_big)
    a_f_ref, s_f_ref = _ve_schedule_ref(t_bf)

    assert a_s.shape == t_small.shape and s_s.shape == t_small.shape
    assert a_b.shape == t_big.shape and s_b.shape == t_big.shape
    assert a_f.shape == t_bf.shape and s_f.shape == t_bf.shape
    assert s_b.dtype == t_big.dtype and s_f.dtype == t_bf.dtype

    assert jnp.allclose(a_s, a_s_ref) and jnp.allclose(a_b, a_b_ref)
    assert jnp.allclose(a_f.astype(jnp.float32), a_f_ref.astype(jnp.float32))

    assert jnp.allclose(s_s, s_s_ref, rtol=2e-5, atol=1e-6)
    assert jnp.allclose(s_b, s_b_ref, rtol=2e-5, atol=1e-6)
    assert jnp.allclose(s_f.astype(jnp.float32), s_f_ref.astype(jnp.float32),
                        rtol=2e-2, atol=1e-4)

    print("KERNEL_OK")
</pallas_src>

<mosaic_0001>
module attributes {stable_mosaic.version = 11 : i64} {
  func.func @_ve_sigma_kernel(%arg0: i32, %arg1: memref<8x32768xf32, #tpu.memory_space<vmem>>, %arg2: memref<8x32768xf32, #tpu.memory_space<vmem>>) attributes {dimension_semantics = [#tpu.dimension_semantics<arbitrary>], iteration_bounds = array<i64: 4>, scalar_prefetch = 0 : i64, scratch_operands = 0 : i64, tpu.core_type = #tpu.core_type<tc>, window_params = [{transform_indices = @transform_0, window_bounds = array<i64: 8, 32768>}, {transform_indices = @transform_1, window_bounds = array<i64: 8, 32768>}]} {
    %c0 = arith.constant 0 : index
    %c0_0 = arith.constant 0 : index
    %0 = vector.load %arg1[%c0, %c0_0] : memref<8x32768xf32, #tpu.memory_space<vmem>>, vector<8x32768xf32>
    %cst = arith.constant 13.8155107 : f32
    %1 = vector.broadcast %cst : f32 to vector<8x32768xf32>
    %2 = arith.mulf %0, %1 : vector<8x32768xf32>
    %cst_1 = arith.constant -6.90775537 : f32
    %3 = vector.broadcast %cst_1 : f32 to vector<8x32768xf32>
    %4 = arith.addf %3, %2 : vector<8x32768xf32>
    %5 = math.exp %4 : vector<8x32768xf32>
    %c0_2 = arith.constant 0 : index
    %c0_3 = arith.constant 0 : index
    %6 = vector.load %arg2[%c0_2, %c0_3] : memref<8x32768xf32, #tpu.memory_space<vmem>>, vector<8x32768xf32>
    tpu.vector_store %arg2[%c0_2, %c0_3], %5 {strides = array<i32>} : memref<8x32768xf32, #tpu.memory_space<vmem>>, vector<8x32768xf32>,
    return
  }
  func.func @transform_0(%arg0: i32) -> (i32, i32) {
    %c0_i32 = arith.constant 0 : i32
    %c0_i32_0 = arith.constant 0 : i32
    return %c0_i32, %arg0 : i32, i32
  }
  func.func @transform_1(%arg0: i32) -> (i32, i32) {
    %c0_i32 = arith.constant 0 : i32
    %c0_i32_0 = arith.constant 0 : i32
    return %c0_i32, %arg0 : i32, i32
  }
}

</mosaic_0001>

<bundles_post_ra>
// kernel: tpu_custom_call.1
= control target key start
LH: loop header
LB: loop body
LE: loop exit
PB: predicated region body
PF: predicated region fallthrough
CT: control target
= control target key end

     0   :  { %6 = vsyncpa [#allocation3], 0  ;;  %s3120_s0 = inlined_call_operand.hbm [shape: f32[8,131072], index: 0, kind: input, shape index: {}]   ;;  %s3121_s1 = inlined_call_operand.hbm [shape: f32[8,131072], index: 1, kind: output, shape index: {}]  }
   0x1   :  { %8 = vsyncpa [#allocation3 + $0x1], 0 }
   0x2   :  { %9 = vsyncpa [#allocation4], 0 }
   0x3   :  { %11 = vsyncpa [#allocation4 + $0x1], 0  ;;  %s2440_s6 = smov 0   ;;  %s2442_s7 = smov 0  }
   0x4   :  { %s2444_s8 = smov 0   ;;  %s2446_s9 = smov 0  }
   0x5 LB: > { %s2461_s10 = sadd.s32 4294967295, %s2426_s9   ;;  %s1756_s11 = sadd.s32 4294967294, %s2426_s9   ;;  %s2426_s9 = sphi %s2446_s9, %s3135_s9   ;;  %s2422_s8 = sphi %s2444_s8, %s3134_s8   ;;  %s2418_s7 = sphi %s2442_s7, %s3133_s7   ;;  %s2414_s6 = sphi %s2440_s6, %s3132_s6  }
   0x6   : > { %s2465_s12 = sadd.s32 1, %s2426_s9   ;;  %s24_s13 = sadd.s32 1, %s2422_s8 }
   0x7   : > { %s21_s14 = ssub.s32 %s2426_s9, %s2465_s12  ;;  %p31_p0 = scmp.ne.s32.totalorder %s2422_s8, %s2418_s7 }
   0x8   : > { %p22_p1 = scmp.eq.s32.totalorder %s21_s14, 0  ;;  %p32_p2 = scmp.eq.s32.totalorder %s2426_s9, 0 }
   0x9   : > { %p37_p3 = scmp.ne.s32.totalorder %s2418_s7, %s2414_s6  ;;  %p38_p4 = scmp.eq.s32.totalorder %s2461_s10, 0 }
   0xa   : > { %s2477_s15 = scalar_select %p22_p1, %s2422_s8, %s24_s13  }
   0xb   : > { %p2479_p5 = por %p32_p2, %p31_p0  ;;  %p2483_p6 = por %p38_p4, %p37_p3 }
   0xc   : > { %p61_p7 = scmp.eq.s32.totalorder %s2461_s10, 3  ;;  %p67_p8 = scmp.eq.s32.totalorder %s1756_s11, 3 }
   0xd   : > { %p1784_p9 = scmp.lt.s32.totalorder %s2426_s9, 4  ;;  %s87_s20 = sand.u32 1, %s2422_s8  }
   0xe   : > { %p2489_p10 = por %p61_p7, %p31_p0  ;;  %p2493_p11 = por %p67_p8, %p37_p3 }
   0xf   : > { %s1770_s21 = sshll.u32 %s2426_s9, 15  ;;  %s1759_s22 = sshll.u32 %s87_s20, 11 }
  0x10   : > { %s3125_s18 = scalar_select %p2489_p10, 1, 0 }
  0x11   : > { %s3126_s19 = scalar_select %p2493_p11, 1, 0 }
  0x12   : > { %s2502_s25 = scalar_lea.hbm %s3120_s0, %s1770_s21  ;;  %s91_s26 = scalar_lea.vmem [#allocation2], %s1759_s22 }
  0x13   : > { %s99_s27 = sshll.u32 %s91_s26, 4  ;;  %p2506_p12 = pnand %p1784_p9, %p2479_p5  ;;  %s2510_s27 = int_to_ptr.vmem [resolvable:$true] %s99_s27 }
  0x14   : > { %s88_s29 = scalar_lea.sflag [#allocation3], %s87_s20  ;;  %s2330_s30 = scalar_lea.hbm %s2502_s25, 32768 }
  0x15   : > { %p2331_p1 = scmp.ne.s32.totalorder %s2502_s25, %s2330_s30  ;;  %p2332_p2 = pneg %p2506_p12 }
  0x16   : > { %s2335_s4 = scalar_lea.hbm %s3120_s0, 131072  ;;  %p2336_p5 = scmp.lt.u32.totalorder %s2502_s25, %s3120_s0 }
  0x17   : > { %p2333_p3 = pnand %p2332_p2, %p2331_p1  ;;  %p2337_p7 = scmp.lt.u32.totalorder %s2335_s4, %s2330_s30 }
  0x18   : > { %p2339_p9 = scmp.lt.u32.totalorder %s2330_s30, %s2502_s25 }
  0x19   : > { %p2334_p4 = pneg %p2333_p3  ;;  %p2338_p8 = por %p2337_p7, %p2336_p5 }
  0x1b   : > { %p2340_p13 = por %p2339_p9, %p2338_p8 }
  0x1d   : > { %p2341_p0 = pnand %p2340_p13, %p2334_p4 }
  0x1f   : > { %2344 = shalt.err (!%p2341_p0)
}
  0x20   : > { %s2345_s13 = scalar_lea.vmem %s2510_s27, 32768  ;;  %s2428_s14 = smov [#allocation2]  }
  0x21   : > { %p2346_p1 = scmp.ne.s32.totalorder %s2510_s27, %s2345_s13  ;;  %s2350_s16 = sshll.u32 %s2428_s14, 4  ;;  %s2351_s16 = int_to_ptr.vmem [resolvable:$false] %s2350_s16 }
  0x22   : > { %s2352_s20 = scalar_lea.vmem %s2351_s16, 65536  ;;  %p2353_p10 = scmp.lt.s32.totalorder %s2510_s27, %s2351_s16 }
  0x23   : > { %p2348_p3 = pnand %p2346_p1, %p2332_p2  ;;  %p2354_p5 = scmp.lt.s32.totalorder %s2352_s20, %s2345_s13 }
  0x25   : > { %p2349_p11 = pneg %p2348_p3  ;;  %p2355_p7 = por %p2354_p5, %p2353_p10 }
  0x27   : > { %p2356_p8 = pnand %p2355_p7, %p2349_p11 }
  0x29   : > { %2359 = shalt.err (!%p2356_p8)
}
  0x2a   : > { %1779 = dma.hbm_to_vmem [thread:$0]  (!%p2506_p12), %s2502_s25, 32768, %s2510_s27, %s88_s29  }
  0x2b   : > { %p3128_p13 = scmp.lt.s32.totalorder %s2426_s9, 5  ;;  %p3129_p0 = scmp.ge.s32.totalorder %s2426_s9, 1 }
  0x2d   : > { %p105_p2 = pnand %p3129_p0, %p3128_p13 }
  0x2e   : > { %s2544_s21 = sand.u32 (!%p105_p2), 1, %s2418_s7  }
  0x2f   : > { %108 = sbr.rel (%p105_p2) target bundleno = 423 (0x1a7), region = 24  ;;  %s1763_s22 = sshll.u32 (!%p105_p2), %s2544_s21, 11 }
  0x30   : > { %s111_s23 = scalar_lea.sflag (!%p105_p2), [#allocation3], %s2544_s21  ;;  %s2550_s24 = scalar_lea.vmem (!%p105_p2), [#allocation2], %s1763_s22 }
  0x36   : > { %2405 = dma.done.wait (%p2483_p6), %s111_s23, 32768  }
  0x37   : > { %2407 = vsyncadd (%p2483_p6), %s111_s23, 4294934528  ;;  %v135_v0 = vld [vmem:[%s2550_s24] sm:$0xff]  ;;  %v136_v1 = vld [vmem:[%s2550_s24 + $0x8] sm:$0xff]  ;;  %s2573_s17 = scalar_lea.vmem [#allocation5], %s1763_s22  ;;  %s1771_s25 = sshll.u32 %s2461_s10, 15 }
  0x38   : > { %v137_v2 = vld [vmem:[%s2550_s24 + $0x10] sm:$0xff]  ;;  %v391_v3 = vmul.f32 13.815511, %v135_v0  ;;  %v392_v4 = vmul.f32 13.815511, %v136_v1  ;;  %v138_v6 = vld [vmem:[%s2550_s24 + $0x18] sm:$0xff]  ;;  %s3075_s29 = scalar_lea.hbm %s3121_s1, %s1771_s25 }
  0x39   : > { %v393_v5 = vmul.f32 13.815511, %v137_v2  ;;  %v139_v7 = vld [vmem:[%s2550_s24 + $0x20] sm:$0xff]  ;;  %v140_v8 = vld [vmem:[%s2550_s24 + $0x28] sm:$0xff]  ;;  %v394_v12 = vmul.f32 13.815511, %v138_v6 }
  0x3a   : > { %v647_v9 = vadd.f32 -6.9077554, %v391_v3  ;;  %v648_v10 = vadd.f32 -6.9077554, %v392_v4  ;;  %v395_v13 = vmul.f32 13.815511, %v139_v7 }
  0x3b   : > { %v649_v11 = vadd.f32 -6.9077554, %v393_v5  ;;  %v396_v14 = vmul.f32 13.815511, %v140_v8  ;;  %v650_v18 = vadd.f32 -6.9077554, %v394_v12 }
  0x3c   : > { %v903_v15 = vmul.f32 1.442695, %v647_v9  ;;  %v905_v16 = vmul.f32 1.442695, %v648_v10  ;;  %v651_v19 = vadd.f32 -6.9077554, %v395_v13 }
  0x3d   : > { %v907_v17 = vmul.f32 1.442695, %v649_v11  ;;  %v652_v20 = vadd.f32 -6.9077554, %v396_v14  ;;  %v141_v21 = vld [vmem:[%s2550_s24 + $0x30] sm:$0xff]  ;;  %v142_v22 = vld [vmem:[%s2550_s24 + $0x38] sm:$0xff] }
  0x3e   : > { %1818 = vpow2.f32 %v903_v15  ;;  %v143_v23 = vld [vmem:[%s2550_s24 + $0x40] sm:$0xff]  ;;  %v909_v24 = vmul.f32 1.442695, %v650_v18  ;;  %v911_v25 = vmul.f32 1.442695, %v651_v19  ;;  %v144_v30 = vld [vmem:[%s2550_s24 + $0x48] sm:$0xff] }
  0x3f   : > { %1820 = vpow2.f32 %v905_v16  ;;  %v913_v26 = vmul.f32 1.442695, %v652_v20  ;;  %v397_v27 = vmul.f32 13.815511, %v141_v21  ;;  %v398_v28 = vmul.f32 13.815511, %v142_v22 }
  0x40   : > { %1822 = vpow2.f32 %v907_v17  ;;  %v399_v29 = vmul.f32 13.815511, %v143_v23  ;;  %v145_v31 = vld [vmem:[%s2550_s24 + $0x50] sm:$0xff]  ;;  %v146_v32 = vld [vmem:[%s2550_s24 + $0x58] sm:$0xff]  ;;  %v400_v36 = vmul.f32 13.815511, %v144_v30 }
  0x41   : > { %1824 = vpow2.f32 %v909_v24  ;;  %v653_v33 = vadd.f32 -6.9077554, %v397_v27  ;;  %v654_v34 = vadd.f32 -6.9077554, %v398_v28  ;;  %v401_v37 = vmul.f32 13.815511, %v145_v31 }
  0x42   : > { %1826 = vpow2.f32 %v911_v25  ;;  %v655_v35 = vadd.f32 -6.9077554, %v399_v29  ;;  %v402_v38 = vmul.f32 13.815511, %v146_v32  ;;  %v656_v42 = vadd.f32 -6.9077554, %v400_v36 }
  0x43   : > { %1828 = vpow2.f32 %v913_v26  ;;  %v915_v39 = vmul.f32 1.442695, %v653_v33  ;;  %v917_v40 = vmul.f32 1.442695, %v654_v34  ;;  %v657_v43 = vadd.f32 -6.9077554, %v401_v37 }
  0x44   : > { %v919_v41 = vmul.f32 1.442695, %v655_v35  ;;  %v658_v44 = vadd.f32 -6.9077554, %v402_v38  ;;  %v147_v45 = vld [vmem:[%s2550_s24 + $0x60] sm:$0xff]  ;;  %v148_v46 = vld [vmem:[%s2550_s24 + $0x68] sm:$0xff] }
  0x45   : > { %1830 = vpow2.f32 %v915_v39  ;;  %v149_v47 = vld [vmem:[%s2550_s24 + $0x70] sm:$0xff]  ;;  %v921_v48 = vmul.f32 1.442695, %v656_v42  ;;  %v923_v49 = vmul.f32 1.442695, %v657_v43  ;;  %v150_v56 = vld [vmem:[%s2550_s24 + $0x78] sm:$0xff] }
  0x46   : > { %1832 = vpow2.f32 %v917_v40  ;;  %v925_v50 = vmul.f32 1.442695, %v658_v44  ;;  %v403_v52 = vmul.f32 13.815511, %v147_v45  ;;  %v404_v53 = vmul.f32 13.815511, %v148_v46 }
  0x47   : > { %1834 = vpow2.f32 %v919_v41  ;;  %v405_v54 = vmul.f32 13.815511, %v149_v47  ;;  %v151_v57 = vld [vmem:[%s2550_s24 + $0x80] sm:$0xff]  ;;  %v152_v58 = vld [vmem:[%s2550_s24 + $0x88] sm:$0xff]  ;;  %v406_v0 = vmul.f32 13.815511, %v150_v56 }
  0x48   : > { %v1819_v51 = vpop.eup %1818  ;;  %1836 = vpow2.f32 %v921_v48  ;;  %v659_v60 = vadd.f32 -6.9077554, %v403_v52  ;;  %v660_v61 = vadd.f32 -6.9077554, %v404_v53  ;;  %v407_v1 = vmul.f32 13.815511, %v151_v57 }
  0x49   : > { %v1821_v55 = vpop.eup %1820  ;;  %1415 = vst [vmem:[%s2573_s17] sm:$0xff] %v1819_v51  ;;  %1838 = vpow2.f32 %v923_v49  ;;  %v661_v62 = vadd.f32 -6.9077554, %v405_v54  ;;  %v408_v2 = vmul.f32 13.815511, %v152_v58  ;;  %v662_v8 = vadd.f32 -6.9077554, %v406_v0 }
  0x4a   : > { %v1823_v59 = vpop.eup %1822  ;;  %1416 = vst [vmem:[%s2573_s17 + $0x8] sm:$0xff] %v1821_v55  ;;  %1840 = vpow2.f32 %v925_v50  ;;  %v927_v4 = vmul.f32 1.442695, %v659_v60  ;;  %v929_v5 = vmul.f32 1.442695, %v660_v61  ;;  %v153_v11 = vld [vmem:[%s2550_s24 + $0x90] sm:$0xff] }
  0x4b   : > { %v1825_v63 = vpop.eup %1824  ;;  %1417 = vst [vmem:[%s2573_s17 + $0x10] sm:$0xff] %v1823_v59  ;;  %v931_v6 = vmul.f32 1.442695, %v661_v62  ;;  %v663_v9 = vadd.f32 -6.9077554, %v407_v1  ;;  %v154_v12 = vld [vmem:[%s2550_s24 + $0x98] sm:$0xff] }
  0x4c   : > { %v1827_v3 = vpop.eup %1826  ;;  %1418 = vst [vmem:[%s2573_s17 + $0x18] sm:$0xff] %v1825_v63  ;;  %v664_v10 = vadd.f32 -6.9077554, %v408_v2  ;;  %1842 = vpow2.f32 %v927_v4  ;;  %v155_v13 = vld [vmem:[%s2550_s24 + $0xa0] sm:$0xff]  ;;  %v933_v14 = vmul.f32 1.442695, %v662_v8 }
  0x4d   : > { %v1829_v7 = vpop.eup %1828  ;;  %1419 = vst [vmem:[%s2573_s17 + $0x20] sm:$0xff] %v1827_v3  ;;  %1844 = vpow2.f32 %v929_v5  ;;  %v935_v15 = vmul.f32 1.442695, %v663_v9  ;;  %v409_v18 = vmul.f32 13.815511, %v153_v11  ;;  %v156_v22 = vld [vmem:[%s2550_s24 + $0xa8] sm:$0xff] }
  0x4e   : > { %1420 = vst [vmem:[%s2573_s17 + $0x28] sm:$0xff] %v1829_v7  ;;  %v937_v16 = vmul.f32 1.442695, %v664_v10  ;;  %1846 = vpow2.f32 %v931_v6  ;;  %v410_v19 = vmul.f32 13.815511, %v154_v12  ;;  %v157_v23 = vld [vmem:[%s2550_s24 + $0xb0] sm:$0xff] }
  0x4f   : > { %v1831_v17 = vpop.eup %1830  ;;  %v411_v20 = vmul.f32 13.815511, %v155_v13  ;;  %1848 = vpow2.f32 %v933_v14  ;;  %v158_v24 = vld [vmem:[%s2550_s24 + $0xb8] sm:$0xff]  ;;  %v665_v26 = vadd.f32 -6.9077554, %v409_v18  ;;  %v159_v41 = vld [vmem:[%s2550_s24 + $0xc0] sm:$0xff] }
  0x50   : > { %v1833_v21 = vpop.eup %1832  ;;  %1421 = vst [vmem:[%s2573_s17 + $0x30] sm:$0xff] %v1831_v17  ;;  %1850 = vpow2.f32 %v935_v15  ;;  %v666_v27 = vadd.f32 -6.9077554, %v410_v19  ;;  %v412_v30 = vmul.f32 13.815511, %v156_v22  ;;  %v160_v42 = vld [vmem:[%s2550_s24 + $0xc8] sm:$0xff] }
  0x51   : > { %v1835_v25 = vpop.eup %1834  ;;  %1422 = vst [vmem:[%s2573_s17 + $0x38] sm:$0xff] %v1833_v21  ;;  %v667_v28 = vadd.f32 -6.9077554, %v411_v20  ;;  %1852 = vpow2.f32 %v937_v16  ;;  %v413_v31 = vmul.f32 13.815511, %v157_v23  ;;  %v161_v43 = vld [vmem:[%s2550_s24 + $0xd0] sm:$0xff] }
  0x52   : > { %v1837_v29 = vpop.eup %1836  ;;  %1423 = vst [vmem:[%s2573_s17 + $0x40] sm:$0xff] %v1835_v25  ;;  %v414_v32 = vmul.f32 13.815511, %v158_v24  ;;  %v939_v34 = vmul.f32 1.442695, %v665_v26  ;;  %v162_v52 = vld [vmem:[%s2550_s24 + $0xd8] sm:$0xff] }
  0x53   : > { %v1839_v33 = vpop.eup %1838  ;;  %1424 = vst [vmem:[%s2573_s17 + $0x48] sm:$0xff] %v1837_v29  ;;  %v941_v35 = vmul.f32 1.442695, %v666_v27  ;;  %v943_v36 = vmul.f32 1.442695, %v667_v28  ;;  %v163_v53 = vld [vmem:[%s2550_s24 + $0xe0] sm:$0xff] }
  0x54   : > { %v1841_v37 = vpop.eup %1840  ;;  %1425 = vst [vmem:[%s2573_s17 + $0x50] sm:$0xff] %v1839_v33  ;;  %v668_v38 = vadd.f32 -6.9077554, %v412_v30  ;;  %v669_v39 = vadd.f32 -6.9077554, %v413_v31  ;;  %1854 = vpow2.f32 %v939_v34  ;;  %v164_v54 = vld [vmem:[%s2550_s24 + $0xe8] sm:$0xff] }
  0x55   : > { %v670_v40 = vadd.f32 -6.9077554, %v414_v32  ;;  %1426 = vst [vmem:[%s2573_s17 + $0x58] sm:$0xff] %v1841_v37  ;;  %1856 = vpow2.f32 %v941_v35  ;;  %v415_v48 = vmul.f32 13.815511, %v159_v41  ;;  %v165_v7 = vld [vmem:[%s2550_s24 + $0xf0] sm:$0xff] }
  0x56   : > { %v945_v44 = vmul.f32 1.442695, %v668_v38  ;;  %v947_v45 = vmul.f32 1.442695, %v669_v39  ;;  %v1843_v47 = vpop.eup %1842  ;;  %1858 = vpow2.f32 %v943_v36  ;;  %v416_v49 = vmul.f32 13.815511, %v160_v42 }
  0x57   : > { %v949_v46 = vmul.f32 1.442695, %v670_v40  ;;  %v417_v50 = vmul.f32 13.815511, %v161_v43  ;;  %v1845_v51 = vpop.eup %1844  ;;  %1427 = vst [vmem:[%s2573_s17 + $0x60] sm:$0xff] %v1843_v47  ;;  %v166_v8 = vld [vmem:[%s2550_s24 + $0xf8] sm:$0xff] }
  0x58   : > { %1860 = vpow2.f32 %v945_v44  ;;  %v1847_v55 = vpop.eup %1846  ;;  %1428 = vst [vmem:[%s2573_s17 + $0x68] sm:$0xff] %v1845_v51  ;;  %v671_v56 = vadd.f32 -6.9077554, %v415_v48  ;;  %v672_v57 = vadd.f32 -6.9077554, %v416_v49  ;;  %v167_v9 = vld [vmem:[%s2550_s24 + $0x100] sm:$0xff] }
  0x59   : > { %1862 = vpow2.f32 %v947_v45  ;;  %v673_v58 = vadd.f32 -6.9077554, %v417_v50  ;;  %v1849_v59 = vpop.eup %1848  ;;  %1429 = vst [vmem:[%s2573_s17 + $0x70] sm:$0xff] %v1847_v55  ;;  %v418_v60 = vmul.f32 13.815511, %v162_v52  ;;  %v168_v18 = vld [vmem:[%s2550_s24 + $0x108] sm:$0xff] }
  0x5a   : > { %1864 = vpow2.f32 %v949_v46  ;;  %v419_v61 = vmul.f32 13.815511, %v163_v53  ;;  %v420_v62 = vmul.f32 13.815511, %v164_v54  ;;  %v1851_v63 = vpop.eup %1850  ;;  %1430 = vst [vmem:[%s2573_s17 + $0x78] sm:$0xff] %v1849_v59  ;;  %v169_v19 = vld [vmem:[%s2550_s24 + $0x110] sm:$0xff] }
  0x5b   : > { %v951_v0 = vmul.f32 1.442695, %v671_v56  ;;  %v953_v1 = vmul.f32 1.442695, %v672_v57  ;;  %v955_v2 = vmul.f32 1.442695, %v673_v58  ;;  %v1853_v3 = vpop.eup %1852 }
  0x5c   : > { %1431 = vst [vmem:[%s2573_s17 + $0x80] sm:$0xff] %v1851_v63  ;;  %v674_v4 = vadd.f32 -6.9077554, %v418_v60  ;;  %v675_v5 = vadd.f32 -6.9077554, %v419_v61  ;;  %1432 = vst [vmem:[%s2573_s17 + $0x88] sm:$0xff] %v1853_v3 }
  0x5d   : > { %v676_v6 = vadd.f32 -6.9077554, %v420_v62  ;;  %1866 = vpow2.f32 %v951_v0  ;;  %v421_v14 = vmul.f32 13.815511, %v165_v7  ;;  %v422_v15 = vmul.f32 13.815511, %v166_v8 }
  0x5e   : > { %1868 = vpow2.f32 %v953_v1  ;;  %v957_v10 = vmul.f32 1.442695, %v674_v4  ;;  %v959_v11 = vmul.f32 1.442695, %v675_v5  ;;  %v1855_v13 = vpop.eup %1854  ;;  %v423_v16 = vmul.f32 13.815511, %v167_v9 }
  0x5f   : > { %v961_v12 = vmul.f32 1.442695, %v676_v6  ;;  %1870 = vpow2.f32 %v955_v2  ;;  %v1857_v17 = vpop.eup %1856  ;;  %1433 = vst [vmem:[%s2573_s17 + $0x90] sm:$0xff] %v1855_v13  ;;  %v170_v20 = vld [vmem:[%s2550_s24 + $0x118] sm:$0xff]  ;;  %v677_v22 = vadd.f32 -6.9077554, %v421_v14 }
  0x60   : > { %1872 = vpow2.f32 %v957_v10  ;;  %v1859_v21 = vpop.eup %1858  ;;  %1434 = vst [vmem:[%s2573_s17 + $0x98] sm:$0xff] %v1857_v17  ;;  %v678_v23 = vadd.f32 -6.9077554, %v422_v15  ;;  %v679_v24 = vadd.f32 -6.9077554, %v423_v16  ;;  %v171_v37 = vld [vmem:[%s2550_s24 + $0x120] sm:$0xff] }
  0x61   : > { %1874 = vpow2.f32 %v959_v11  ;;  %1435 = vst [vmem:[%s2573_s17 + $0xa0] sm:$0xff] %v1859_v21  ;;  %v424_v26 = vmul.f32 13.815511, %v168_v18  ;;  %v425_v27 = vmul.f32 13.815511, %v169_v19  ;;  %v172_v38 = vld [vmem:[%s2550_s24 + $0x128] sm:$0xff] }
  0x62   : > { %v1861_v25 = vpop.eup %1860  ;;  %1876 = vpow2.f32 %v961_v12  ;;  %v426_v28 = vmul.f32 13.815511, %v170_v20  ;;  %v963_v30 = vmul.f32 1.442695, %v677_v22  ;;  %v965_v31 = vmul.f32 1.442695, %v678_v23 }
  0x63   : > { %v1863_v29 = vpop.eup %1862  ;;  %1436 = vst [vmem:[%s2573_s17 + $0xa8] sm:$0xff] %v1861_v25  ;;  %v967_v32 = vmul.f32 1.442695, %v679_v24  ;;  %v680_v34 = vadd.f32 -6.9077554, %v424_v26  ;;  %v173_v39 = vld [vmem:[%s2550_s24 + $0x130] sm:$0xff] }
  0x64   : > { %v1865_v33 = vpop.eup %1864  ;;  %1437 = vst [vmem:[%s2573_s17 + $0xb0] sm:$0xff] %v1863_v29  ;;  %v681_v35 = vadd.f32 -6.9077554, %v425_v27  ;;  %v682_v36 = vadd.f32 -6.9077554, %v426_v28  ;;  %1878 = vpow2.f32 %v963_v30  ;;  %v174_v48 = vld [vmem:[%s2550_s24 + $0x138] sm:$0xff] }
  0x65   : > { %1438 = vst [vmem:[%s2573_s17 + $0xb8] sm:$0xff] %v1865_v33  ;;  %1880 = vpow2.f32 %v965_v31  ;;  %v969_v40 = vmul.f32 1.442695, %v680_v34  ;;  %v427_v44 = vmul.f32 13.815511, %v171_v37  ;;  %v175_v49 = vld [vmem:[%s2550_s24 + $0x140] sm:$0xff] }
  0x66   : > { %v971_v41 = vmul.f32 1.442695, %v681_v35  ;;  %v973_v42 = vmul.f32 1.442695, %v682_v36  ;;  %1882 = vpow2.f32 %v967_v32  ;;  %v428_v45 = vmul.f32 13.815511, %v172_v38 }
  0x67   : > { %v1867_v43 = vpop.eup %1866  ;;  %v429_v46 = vmul.f32 13.815511, %v173_v39  ;;  %1884 = vpow2.f32 %v969_v40  ;;  %v176_v50 = vld [vmem:[%s2550_s24 + $0x148] sm:$0xff]  ;;  %v683_v52 = vadd.f32 -6.9077554, %v427_v44  ;;  %v177_v3 = vld [vmem:[%s2550_s24 + $0x150] sm:$0xff] }
  0x68   : > { %v1869_v47 = vpop.eup %1868  ;;  %1439 = vst [vmem:[%s2573_s17 + $0xc0] sm:$0xff] %v1867_v43  ;;  %1886 = vpow2.f32 %v971_v41  ;;  %v684_v53 = vadd.f32 -6.9077554, %v428_v45  ;;  %v430_v56 = vmul.f32 13.815511, %v174_v48  ;;  %v178_v4 = vld [vmem:[%s2550_s24 + $0x158] sm:$0xff] }
  0x69   : > { %v1871_v51 = vpop.eup %1870  ;;  %1440 = vst [vmem:[%s2573_s17 + $0xc8] sm:$0xff] %v1869_v47  ;;  %v685_v54 = vadd.f32 -6.9077554, %v429_v46  ;;  %1888 = vpow2.f32 %v973_v42  ;;  %v431_v57 = vmul.f32 13.815511, %v175_v49  ;;  %v179_v5 = vld [vmem:[%s2550_s24 + $0x160] sm:$0xff] }
  0x6a   : > { %v1873_v55 = vpop.eup %1872  ;;  %1441 = vst [vmem:[%s2573_s17 + $0xd0] sm:$0xff] %v1871_v51  ;;  %v432_v58 = vmul.f32 13.815511, %v176_v50  ;;  %v975_v60 = vmul.f32 1.442695, %v683_v52  ;;  %v180_v14 = vld [vmem:[%s2550_s24 + $0x168] sm:$0xff] }
  0x6b   : > { %v1875_v59 = vpop.eup %1874  ;;  %1442 = vst [vmem:[%s2573_s17 + $0xd8] sm:$0xff] %v1873_v55  ;;  %v977_v61 = vmul.f32 1.442695, %v684_v53  ;;  %v979_v62 = vmul.f32 1.442695, %v685_v54  ;;  %v181_v15 = vld [vmem:[%s2550_s24 + $0x170] sm:$0xff] }
  0x6c   : > { %v1877_v63 = vpop.eup %1876  ;;  %1443 = vst [vmem:[%s2573_s17 + $0xe0] sm:$0xff] %v1875_v59  ;;  %v686_v0 = vadd.f32 -6.9077554, %v430_v56  ;;  %v687_v1 = vadd.f32 -6.9077554, %v431_v57  ;;  %1890 = vpow2.f32 %v975_v60  ;;  %v182_v16 = vld [vmem:[%s2550_s24 + $0x178] sm:$0xff] }
  0x6d   : > { %v688_v2 = vadd.f32 -6.9077554, %v432_v58  ;;  %1444 = vst [vmem:[%s2573_s17 + $0xe8] sm:$0xff] %v1877_v63  ;;  %1892 = vpow2.f32 %v977_v61  ;;  %v433_v10 = vmul.f32 13.815511, %v177_v3  ;;  %v183_v33 = vld [vmem:[%s2550_s24 + $0x180] sm:$0xff] }
  0x6e   : > { %v981_v6 = vmul.f32 1.442695, %v686_v0  ;;  %v983_v7 = vmul.f32 1.442695, %v687_v1  ;;  %v1879_v9 = vpop.eup %1878  ;;  %1894 = vpow2.f32 %v979_v62  ;;  %v434_v11 = vmul.f32 13.815511, %v178_v4 }
  0x6f   : > { %v985_v8 = vmul.f32 1.442695, %v688_v2  ;;  %v435_v12 = vmul.f32 13.815511, %v179_v5  ;;  %v1881_v13 = vpop.eup %1880  ;;  %1445 = vst [vmem:[%s2573_s17 + $0xf0] sm:$0xff] %v1879_v9  ;;  %v184_v34 = vld [vmem:[%s2550_s24 + $0x188] sm:$0xff] }
  0x70   : > { %1896 = vpow2.f32 %v981_v6  ;;  %v1883_v17 = vpop.eup %1882  ;;  %1446 = vst [vmem:[%s2573_s17 + $0xf8] sm:$0xff] %v1881_v13  ;;  %v689_v18 = vadd.f32 -6.9077554, %v433_v10  ;;  %v690_v19 = vadd.f32 -6.9077554, %v434_v11  ;;  %v185_v35 = vld [vmem:[%s2550_s24 + $0x190] sm:$0xff] }
  0x71   : > { %1898 = vpow2.f32 %v983_v7  ;;  %v691_v20 = vadd.f32 -6.9077554, %v435_v12  ;;  %v1885_v21 = vpop.eup %1884  ;;  %1447 = vst [vmem:[%s2573_s17 + $0x100] sm:$0xff] %v1883_v17  ;;  %v436_v22 = vmul.f32 13.815511, %v180_v14  ;;  %v186_v44 = vld [vmem:[%s2550_s24 + $0x198] sm:$0xff] }
  0x72   : > { %1900 = vpow2.f32 %v985_v8  ;;  %v437_v23 = vmul.f32 13.815511, %v181_v15  ;;  %v438_v24 = vmul.f32 13.815511, %v182_v16  ;;  %v1887_v25 = vpop.eup %1886  ;;  %1448 = vst [vmem:[%s2573_s17 + $0x108] sm:$0xff] %v1885_v21  ;;  %v187_v45 = vld [vmem:[%s2550_s24 + $0x1a0] sm:$0xff] }
  0x73   : > { %v987_v26 = vmul.f32 1.442695, %v689_v18  ;;  %v989_v27 = vmul.f32 1.442695, %v690_v19  ;;  %v991_v28 = vmul.f32 1.442695, %v691_v20  ;;  %v1889_v29 = vpop.eup %1888 }
  0x74   : > { %1449 = vst [vmem:[%s2573_s17 + $0x110] sm:$0xff] %v1887_v25  ;;  %v692_v30 = vadd.f32 -6.9077554, %v436_v22  ;;  %v693_v31 = vadd.f32 -6.9077554, %v437_v23  ;;  %1450 = vst [vmem:[%s2573_s17 + $0x118] sm:$0xff] %v1889_v29 }
  0x75   : > { %v694_v32 = vadd.f32 -6.9077554, %v438_v24  ;;  %1902 = vpow2.f32 %v987_v26  ;;  %v439_v40 = vmul.f32 13.815511, %v183_v33  ;;  %v440_v41 = vmul.f32 13.815511, %v184_v34 }
  0x76   : > { %1904 = vpow2.f32 %v989_v27  ;;  %v993_v36 = vmul.f32 1.442695, %v692_v30  ;;  %v995_v37 = vmul.f32 1.442695, %v693_v31  ;;  %v1891_v39 = vpop.eup %1890  ;;  %v441_v42 = vmul.f32 13.815511, %v185_v35 }
  0x77   : > { %v997_v38 = vmul.f32 1.442695, %v694_v32  ;;  %1906 = vpow2.f32 %v991_v28  ;;  %v1893_v43 = vpop.eup %1892  ;;  %1451 = vst [vmem:[%s2573_s17 + $0x120] sm:$0xff] %v1891_v39  ;;  %v188_v46 = vld [vmem:[%s2550_s24 + $0x1a8] sm:$0xff]  ;;  %v695_v48 = vadd.f32 -6.9077554, %v439_v40 }
  0x78   : > { %1908 = vpow2.f32 %v993_v36  ;;  %v1895_v47 = vpop.eup %1894  ;;  %1452 = vst [vmem:[%s2573_s17 + $0x128] sm:$0xff] %v1893_v43  ;;  %v696_v49 = vadd.f32 -6.9077554, %v440_v41  ;;  %v697_v50 = vadd.f32 -6.9077554, %v441_v42  ;;  %v189_v63 = vld [vmem:[%s2550_s24 + $0x1b0] sm:$0xff] }
  0x79   : > { %1910 = vpow2.f32 %v995_v37  ;;  %1453 = vst [vmem:[%s2573_s17 + $0x130] sm:$0xff] %v1895_v47  ;;  %v442_v52 = vmul.f32 13.815511, %v186_v44  ;;  %v443_v53 = vmul.f32 13.815511, %v187_v45  ;;  %v190_v0 = vld [vmem:[%s2550_s24 + $0x1b8] sm:$0xff] }
  0x7a   : > { %v1897_v51 = vpop.eup %1896  ;;  %1912 = vpow2.f32 %v997_v38  ;;  %v444_v54 = vmul.f32 13.815511, %v188_v46  ;;  %v999_v56 = vmul.f32 1.442695, %v695_v48  ;;  %v1001_v57 = vmul.f32 1.442695, %v696_v49 }
  0x7b   : > { %v1899_v55 = vpop.eup %1898  ;;  %1454 = vst [vmem:[%s2573_s17 + $0x138] sm:$0xff] %v1897_v51  ;;  %v1003_v58 = vmul.f32 1.442695, %v697_v50  ;;  %v698_v60 = vadd.f32 -6.9077554, %v442_v52  ;;  %v191_v1 = vld [vmem:[%s2550_s24 + $0x1c0] sm:$0xff] }
  0x7c   : > { %v1901_v59 = vpop.eup %1900  ;;  %1455 = vst [vmem:[%s2573_s17 + $0x140] sm:$0xff] %v1899_v55  ;;  %v699_v61 = vadd.f32 -6.9077554, %v443_v53  ;;  %v700_v62 = vadd.f32 -6.9077554, %v444_v54  ;;  %1914 = vpow2.f32 %v999_v56  ;;  %v192_v10 = vld [vmem:[%s2550_s24 + $0x1c8] sm:$0xff] }
  0x7d   : > { %1456 = vst [vmem:[%s2573_s17 + $0x148] sm:$0xff] %v1901_v59  ;;  %1916 = vpow2.f32 %v1001_v57  ;;  %v1005_v2 = vmul.f32 1.442695, %v698_v60  ;;  %v445_v6 = vmul.f32 13.815511, %v189_v63  ;;  %v193_v11 = vld [vmem:[%s2550_s24 + $0x1d0] sm:$0xff] }
  0x7e   : > { %v1007_v3 = vmul.f32 1.442695, %v699_v61  ;;  %v1009_v4 = vmul.f32 1.442695, %v700_v62  ;;  %1918 = vpow2.f32 %v1003_v58  ;;  %v446_v7 = vmul.f32 13.815511, %v190_v0 }
  0x7f   : > { %v1903_v5 = vpop.eup %1902  ;;  %v447_v8 = vmul.f32 13.815511, %v191_v1  ;;  %1920 = vpow2.f32 %v1005_v2  ;;  %v194_v12 = vld [vmem:[%s2550_s24 + $0x1d8] sm:$0xff]  ;;  %v701_v14 = vadd.f32 -6.9077554, %v445_v6  ;;  %v195_v29 = vld [vmem:[%s2550_s24 + $0x1e0] sm:$0xff] }
  0x80   : > { %v1905_v9 = vpop.eup %1904  ;;  %1457 = vst [vmem:[%s2573_s17 + $0x150] sm:$0xff] %v1903_v5  ;;  %1922 = vpow2.f32 %v1007_v3  ;;  %v702_v15 = vadd.f32 -6.9077554, %v446_v7  ;;  %v448_v18 = vmul.f32 13.815511, %v192_v10  ;;  %v196_v30 = vld [vmem:[%s2550_s24 + $0x1e8] sm:$0xff] }
  0x81   : > { %v1907_v13 = vpop.eup %1906  ;;  %1458 = vst [vmem:[%s2573_s17 + $0x158] sm:$0xff] %v1905_v9  ;;  %v703_v16 = vadd.f32 -6.9077554, %v447_v8  ;;  %1924 = vpow2.f32 %v1009_v4  ;;  %v449_v19 = vmul.f32 13.815511, %v193_v11  ;;  %v197_v31 = vld [vmem:[%s2550_s24 + $0x1f0] sm:$0xff] }
  0x82   : > { %v1909_v17 = vpop.eup %1908  ;;  %1459 = vst [vmem:[%s2573_s17 + $0x160] sm:$0xff] %v1907_v13  ;;  %v450_v20 = vmul.f32 13.815511, %v194_v12  ;;  %v1011_v22 = vmul.f32 1.442695, %v701_v14  ;;  %v198_v40 = vld [vmem:[%s2550_s24 + $0x1f8] sm:$0xff] }
  0x83   : > { %v1911_v21 = vpop.eup %1910  ;;  %1460 = vst [vmem:[%s2573_s17 + $0x168] sm:$0xff] %v1909_v17  ;;  %v1013_v23 = vmul.f32 1.442695, %v702_v15  ;;  %v1015_v24 = vmul.f32 1.442695, %v703_v16  ;;  %v199_v41 = vld [vmem:[%s2550_s24 + $0x200] sm:$0xff] }
  0x84   : > { %v1913_v25 = vpop.eup %1912  ;;  %1461 = vst [vmem:[%s2573_s17 + $0x170] sm:$0xff] %v1911_v21  ;;  %v704_v26 = vadd.f32 -6.9077554, %v448_v18  ;;  %v705_v27 = vadd.f32 -6.9077554, %v449_v19  ;;  %1926 = vpow2.f32 %v1011_v22  ;;  %v200_v42 = vld [vmem:[%s2550_s24 + $0x208] sm:$0xff] }
  0x85   : > { %v706_v28 = vadd.f32 -6.9077554, %v450_v20  ;;  %1462 = vst [vmem:[%s2573_s17 + $0x178] sm:$0xff] %v1913_v25  ;;  %1928 = vpow2.f32 %v1013_v23  ;;  %v451_v36 = vmul.f32 13.815511, %v195_v29  ;;  %v201_v59 = vld [vmem:[%s2550_s24 + $0x210] sm:$0xff] }
  0x86   : > { %v1017_v32 = vmul.f32 1.442695, %v704_v26  ;;  %v1019_v33 = vmul.f32 1.442695, %v705_v27  ;;  %v1915_v35 = vpop.eup %1914  ;;  %1930 = vpow2.f32 %v1015_v24  ;;  %v452_v37 = vmul.f32 13.815511, %v196_v30 }
  0x87   : > { %v1021_v34 = vmul.f32 1.442695, %v706_v28  ;;  %v453_v38 = vmul.f32 13.815511, %v197_v31  ;;  %v1917_v39 = vpop.eup %1916  ;;  %1463 = vst [vmem:[%s2573_s17 + $0x180] sm:$0xff] %v1915_v35  ;;  %v202_v60 = vld [vmem:[%s2550_s24 + $0x218] sm:$0xff] }
  0x88   : > { %1932 = vpow2.f32 %v1017_v32  ;;  %v1919_v43 = vpop.eup %1918  ;;  %1464 = vst [vmem:[%s2573_s17 + $0x188] sm:$0xff] %v1917_v39  ;;  %v707_v44 = vadd.f32 -6.9077554, %v451_v36  ;;  %v708_v45 = vadd.f32 -6.9077554, %v452_v37  ;;  %v203_v61 = vld [vmem:[%s2550_s24 + $0x220] sm:$0xff] }
  0x89   : > { %1934 = vpow2.f32 %v1019_v33  ;;  %v709_v46 = vadd.f32 -6.9077554, %v453_v38  ;;  %v1921_v47 = vpop.eup %1920  ;;  %1465 = vst [vmem:[%s2573_s17 + $0x190] sm:$0xff] %v1919_v43  ;;  %v454_v48 = vmul.f32 13.815511, %v198_v40  ;;  %v204_v6 = vld [vmem:[%s2550_s24 + $0x228] sm:$0xff] }
  0x8a   : > { %1936 = vpow2.f32 %v1021_v34  ;;  %v455_v49 = vmul.f32 13.815511, %v199_v41  ;;  %v456_v50 = vmul.f32 13.815511, %v200_v42  ;;  %v1923_v51 = vpop.eup %1922  ;;  %1466 = vst [vmem:[%s2573_s17 + $0x198] sm:$0xff] %v1921_v47  ;;  %v205_v7 = vld [vmem:[%s2550_s24 + $0x230] sm:$0xff] }
  0x8b   : > { %v1023_v52 = vmul.f32 1.442695, %v707_v44  ;;  %v1025_v53 = vmul.f32 1.442695, %v708_v45  ;;  %v1027_v54 = vmul.f32 1.442695, %v709_v46  ;;  %v1925_v55 = vpop.eup %1924 }
  0x8c   : > { %1467 = vst [vmem:[%s2573_s17 + $0x1a0] sm:$0xff] %v1923_v51  ;;  %v710_v56 = vadd.f32 -6.9077554, %v454_v48  ;;  %v711_v57 = vadd.f32 -6.9077554, %v455_v49  ;;  %1468 = vst [vmem:[%s2573_s17 + $0x1a8] sm:$0xff] %v1925_v55 }
  0x8d   : > { %v712_v58 = vadd.f32 -6.9077554, %v456_v50  ;;  %1938 = vpow2.f32 %v1023_v52  ;;  %v457_v2 = vmul.f32 13.815511, %v201_v59  ;;  %v458_v3 = vmul.f32 13.815511, %v202_v60 }
  0x8e   : > { %1940 = vpow2.f32 %v1025_v53  ;;  %v1029_v62 = vmul.f32 1.442695, %v710_v56  ;;  %v1031_v63 = vmul.f32 1.442695, %v711_v57  ;;  %v1927_v1 = vpop.eup %1926  ;;  %v459_v4 = vmul.f32 13.815511, %v203_v61 }
  0x8f   : > { %v1033_v0 = vmul.f32 1.442695, %v712_v58  ;;  %1942 = vpow2.f32 %v1027_v54  ;;  %v1929_v5 = vpop.eup %1928  ;;  %1469 = vst [vmem:[%s2573_s17 + $0x1b0] sm:$0xff] %v1927_v1  ;;  %v206_v8 = vld [vmem:[%s2550_s24 + $0x238] sm:$0xff]  ;;  %v713_v10 = vadd.f32 -6.9077554, %v457_v2 }
  0x90   : > { %1944 = vpow2.f32 %v1029_v62  ;;  %v1931_v9 = vpop.eup %1930  ;;  %1470 = vst [vmem:[%s2573_s17 + $0x1b8] sm:$0xff] %v1929_v5  ;;  %v714_v11 = vadd.f32 -6.9077554, %v458_v3  ;;  %v715_v12 = vadd.f32 -6.9077554, %v459_v4  ;;  %v207_v25 = vld [vmem:[%s2550_s24 + $0x240] sm:$0xff] }
  0x91   : > { %1946 = vpow2.f32 %v1031_v63  ;;  %1471 = vst [vmem:[%s2573_s17 + $0x1c0] sm:$0xff] %v1931_v9  ;;  %v460_v14 = vmul.f32 13.815511, %v204_v6  ;;  %v461_v15 = vmul.f32 13.815511, %v205_v7  ;;  %v208_v26 = vld [vmem:[%s2550_s24 + $0x248] sm:$0xff] }
  0x92   : > { %v1933_v13 = vpop.eup %1932  ;;  %1948 = vpow2.f32 %v1033_v0  ;;  %v462_v16 = vmul.f32 13.815511, %v206_v8  ;;  %v1035_v18 = vmul.f32 1.442695, %v713_v10  ;;  %v1037_v19 = vmul.f32 1.442695, %v714_v11 }
  0x93   : > { %v1935_v17 = vpop.eup %1934  ;;  %1472 = vst [vmem:[%s2573_s17 + $0x1c8] sm:$0xff] %v1933_v13  ;;  %v1039_v20 = vmul.f32 1.442695, %v715_v12  ;;  %v716_v22 = vadd.f32 -6.9077554, %v460_v14  ;;  %v209_v27 = vld [vmem:[%s2550_s24 + $0x250] sm:$0xff] }
  0x94   : > { %v1937_v21 = vpop.eup %1936  ;;  %1473 = vst [vmem:[%s2573_s17 + $0x1d0] sm:$0xff] %v1935_v17  ;;  %v717_v23 = vadd.f32 -6.9077554, %v461_v15  ;;  %v718_v24 = vadd.f32 -6.9077554, %v462_v16  ;;  %1950 = vpow2.f32 %v1035_v18  ;;  %v210_v36 = vld [vmem:[%s2550_s24 + $0x258] sm:$0xff] }
  0x95   : > { %1474 = vst [vmem:[%s2573_s17 + $0x1d8] sm:$0xff] %v1937_v21  ;;  %1952 = vpow2.f32 %v1037_v19  ;;  %v1041_v28 = vmul.f32 1.442695, %v716_v22  ;;  %v463_v32 = vmul.f32 13.815511, %v207_v25  ;;  %v211_v37 = vld [vmem:[%s2550_s24 + $0x260] sm:$0xff] }
  0x96   : > { %v1043_v29 = vmul.f32 1.442695, %v717_v23  ;;  %v1045_v30 = vmul.f32 1.442695, %v718_v24  ;;  %1954 = vpow2.f32 %v1039_v20  ;;  %v464_v33 = vmul.f32 13.815511, %v208_v26 }
  0x97   : > { %v1939_v31 = vpop.eup %1938  ;;  %v465_v34 = vmul.f32 13.815511, %v209_v27  ;;  %1956 = vpow2.f32 %v1041_v28  ;;  %v212_v38 = vld [vmem:[%s2550_s24 + $0x268] sm:$0xff]  ;;  %v719_v40 = vadd.f32 -6.9077554, %v463_v32  ;;  %v213_v55 = vld [vmem:[%s2550_s24 + $0x270] sm:$0xff] }
  0x98   : > { %v1941_v35 = vpop.eup %1940  ;;  %1475 = vst [vmem:[%s2573_s17 + $0x1e0] sm:$0xff] %v1939_v31  ;;  %1958 = vpow2.f32 %v1043_v29  ;;  %v720_v41 = vadd.f32 -6.9077554, %v464_v33  ;;  %v466_v44 = vmul.f32 13.815511, %v210_v36  ;;  %v214_v56 = vld [vmem:[%s2550_s24 + $0x278] sm:$0xff] }
  0x99   : > { %v1943_v39 = vpop.eup %1942  ;;  %1476 = vst [vmem:[%s2573_s17 + $0x1e8] sm:$0xff] %v1941_v35  ;;  %v721_v42 = vadd.f32 -6.9077554, %v465_v34  ;;  %1960 = vpow2.f32 %v1045_v30  ;;  %v467_v45 = vmul.f32 13.815511, %v211_v37  ;;  %v215_v57 = vld [vmem:[%s2550_s24 + $0x280] sm:$0xff] }
  0x9a   : > { %v1945_v43 = vpop.eup %1944  ;;  %1477 = vst [vmem:[%s2573_s17 + $0x1f0] sm:$0xff] %v1943_v39  ;;  %v468_v46 = vmul.f32 13.815511, %v212_v38  ;;  %v1047_v48 = vmul.f32 1.442695, %v719_v40  ;;  %v216_v2 = vld [vmem:[%s2550_s24 + $0x288] sm:$0xff] }
  0x9b   : > { %v1947_v47 = vpop.eup %1946  ;;  %1478 = vst [vmem:[%s2573_s17 + $0x1f8] sm:$0xff] %v1945_v43  ;;  %v1049_v49 = vmul.f32 1.442695, %v720_v41  ;;  %v1051_v50 = vmul.f32 1.442695, %v721_v42  ;;  %v217_v3 = vld [vmem:[%s2550_s24 + $0x290] sm:$0xff] }
  0x9c   : > { %v1949_v51 = vpop.eup %1948  ;;  %1479 = vst [vmem:[%s2573_s17 + $0x200] sm:$0xff] %v1947_v47  ;;  %v722_v52 = vadd.f32 -6.9077554, %v466_v44  ;;  %v723_v53 = vadd.f32 -6.9077554, %v467_v45  ;;  %1962 = vpow2.f32 %v1047_v48  ;;  %v218_v4 = vld [vmem:[%s2550_s24 + $0x298] sm:$0xff] }
  0x9d   : > { %v724_v54 = vadd.f32 -6.9077554, %v468_v46  ;;  %1480 = vst [vmem:[%s2573_s17 + $0x208] sm:$0xff] %v1949_v51  ;;  %1964 = vpow2.f32 %v1049_v49  ;;  %v469_v62 = vmul.f32 13.815511, %v213_v55  ;;  %v219_v21 = vld [vmem:[%s2550_s24 + $0x2a0] sm:$0xff] }
  0x9e   : > { %v1053_v58 = vmul.f32 1.442695, %v722_v52  ;;  %v1055_v59 = vmul.f32 1.442695, %v723_v53  ;;  %v1951_v61 = vpop.eup %1950  ;;  %1966 = vpow2.f32 %v1051_v50  ;;  %v470_v63 = vmul.f32 13.815511, %v214_v56 }
  0x9f   : > { %v1057_v60 = vmul.f32 1.442695, %v724_v54  ;;  %v471_v0 = vmul.f32 13.815511, %v215_v57  ;;  %v1953_v1 = vpop.eup %1952  ;;  %1481 = vst [vmem:[%s2573_s17 + $0x210] sm:$0xff] %v1951_v61  ;;  %v220_v22 = vld [vmem:[%s2550_s24 + $0x2a8] sm:$0xff] }
  0xa0   : > { %1968 = vpow2.f32 %v1053_v58  ;;  %v1955_v5 = vpop.eup %1954  ;;  %1482 = vst [vmem:[%s2573_s17 + $0x218] sm:$0xff] %v1953_v1  ;;  %v725_v6 = vadd.f32 -6.9077554, %v469_v62  ;;  %v726_v7 = vadd.f32 -6.9077554, %v470_v63  ;;  %v221_v23 = vld [vmem:[%s2550_s24 + $0x2b0] sm:$0xff] }
  0xa1   : > { %1970 = vpow2.f32 %v1055_v59  ;;  %v727_v8 = vadd.f32 -6.9077554, %v471_v0  ;;  %v1957_v9 = vpop.eup %1956  ;;  %1483 = vst [vmem:[%s2573_s17 + $0x220] sm:$0xff] %v1955_v5  ;;  %v472_v10 = vmul.f32 13.815511, %v216_v2  ;;  %v222_v32 = vld [vmem:[%s2550_s24 + $0x2b8] sm:$0xff] }
  0xa2   : > { %1972 = vpow2.f32 %v1057_v60  ;;  %v473_v11 = vmul.f32 13.815511, %v217_v3  ;;  %v474_v12 = vmul.f32 13.815511, %v218_v4  ;;  %v1959_v13 = vpop.eup %1958  ;;  %1484 = vst [vmem:[%s2573_s17 + $0x228] sm:$0xff] %v1957_v9  ;;  %v223_v33 = vld [vmem:[%s2550_s24 + $0x2c0] sm:$0xff] }
  0xa3   : > { %v1059_v14 = vmul.f32 1.442695, %v725_v6  ;;  %v1061_v15 = vmul.f32 1.442695, %v726_v7  ;;  %v1063_v16 = vmul.f32 1.442695, %v727_v8  ;;  %v1961_v17 = vpop.eup %1960 }
  0xa4   : > { %1485 = vst [vmem:[%s2573_s17 + $0x230] sm:$0xff] %v1959_v13  ;;  %v728_v18 = vadd.f32 -6.9077554, %v472_v10  ;;  %v729_v19 = vadd.f32 -6.9077554, %v473_v11  ;;  %1486 = vst [vmem:[%s2573_s17 + $0x238] sm:$0xff] %v1961_v17 }
  0xa5   : > { %v730_v20 = vadd.f32 -6.9077554, %v474_v12  ;;  %1974 = vpow2.f32 %v1059_v14  ;;  %v475_v28 = vmul.f32 13.815511, %v219_v21  ;;  %v476_v29 = vmul.f32 13.815511, %v220_v22 }
  0xa6   : > { %1976 = vpow2.f32 %v1061_v15  ;;  %v1065_v24 = vmul.f32 1.442695, %v728_v18  ;;  %v1067_v25 = vmul.f32 1.442695, %v729_v19  ;;  %v1963_v27 = vpop.eup %1962  ;;  %v477_v30 = vmul.f32 13.815511, %v221_v23 }
  0xa7   : > { %v1069_v26 = vmul.f32 1.442695, %v730_v20  ;;  %1978 = vpow2.f32 %v1063_v16  ;;  %v1965_v31 = vpop.eup %1964  ;;  %1487 = vst [vmem:[%s2573_s17 + $0x240] sm:$0xff] %v1963_v27  ;;  %v224_v34 = vld [vmem:[%s2550_s24 + $0x2c8] sm:$0xff]  ;;  %v731_v36 = vadd.f32 -6.9077554, %v475_v28 }
  0xa8   : > { %1980 = vpow2.f32 %v1065_v24  ;;  %v1967_v35 = vpop.eup %1966  ;;  %1488 = vst [vmem:[%s2573_s17 + $0x248] sm:$0xff] %v1965_v31  ;;  %v732_v37 = vadd.f32 -6.9077554, %v476_v29  ;;  %v733_v38 = vadd.f32 -6.9077554, %v477_v30  ;;  %v225_v51 = vld [vmem:[%s2550_s24 + $0x2d0] sm:$0xff] }
  0xa9   : > { %1982 = vpow2.f32 %v1067_v25  ;;  %1489 = vst [vmem:[%s2573_s17 + $0x250] sm:$0xff] %v1967_v35  ;;  %v478_v40 = vmul.f32 13.815511, %v222_v32  ;;  %v479_v41 = vmul.f32 13.815511, %v223_v33  ;;  %v226_v52 = vld [vmem:[%s2550_s24 + $0x2d8] sm:$0xff] }
  0xaa   : > { %v1969_v39 = vpop.eup %1968  ;;  %1984 = vpow2.f32 %v1069_v26  ;;  %v480_v42 = vmul.f32 13.815511, %v224_v34  ;;  %v1071_v44 = vmul.f32 1.442695, %v731_v36  ;;  %v1073_v45 = vmul.f32 1.442695, %v732_v37 }
  0xab   : > { %v1971_v43 = vpop.eup %1970  ;;  %1490 = vst [vmem:[%s2573_s17 + $0x258] sm:$0xff] %v1969_v39  ;;  %v1075_v46 = vmul.f32 1.442695, %v733_v38  ;;  %v734_v48 = vadd.f32 -6.9077554, %v478_v40  ;;  %v227_v53 = vld [vmem:[%s2550_s24 + $0x2e0] sm:$0xff] }
  0xac   : > { %v1973_v47 = vpop.eup %1972  ;;  %1491 = vst [vmem:[%s2573_s17 + $0x260] sm:$0xff] %v1971_v43  ;;  %v735_v49 = vadd.f32 -6.9077554, %v479_v41  ;;  %v736_v50 = vadd.f32 -6.9077554, %v480_v42  ;;  %1986 = vpow2.f32 %v1071_v44  ;;  %v228_v62 = vld [vmem:[%s2550_s24 + $0x2e8] sm:$0xff] }
  0xad   : > { %1492 = vst [vmem:[%s2573_s17 + $0x268] sm:$0xff] %v1973_v47  ;;  %1988 = vpow2.f32 %v1073_v45  ;;  %v1077_v54 = vmul.f32 1.442695, %v734_v48  ;;  %v481_v58 = vmul.f32 13.815511, %v225_v51  ;;  %v229_v63 = vld [vmem:[%s2550_s24 + $0x2f0] sm:$0xff] }
  0xae   : > { %v1079_v55 = vmul.f32 1.442695, %v735_v49  ;;  %v1081_v56 = vmul.f32 1.442695, %v736_v50  ;;  %1990 = vpow2.f32 %v1075_v46  ;;  %v482_v59 = vmul.f32 13.815511, %v226_v52 }
  0xaf   : > { %v1975_v57 = vpop.eup %1974  ;;  %v483_v60 = vmul.f32 13.815511, %v227_v53  ;;  %1992 = vpow2.f32 %v1077_v54  ;;  %v230_v0 = vld [vmem:[%s2550_s24 + $0x2f8] sm:$0xff]  ;;  %v737_v2 = vadd.f32 -6.9077554, %v481_v58  ;;  %v231_v17 = vld [vmem:[%s2550_s24 + $0x300] sm:$0xff] }
  0xb0   : > { %v1977_v61 = vpop.eup %1976  ;;  %1493 = vst [vmem:[%s2573_s17 + $0x270] sm:$0xff] %v1975_v57  ;;  %1994 = vpow2.f32 %v1079_v55  ;;  %v738_v3 = vadd.f32 -6.9077554, %v482_v59  ;;  %v484_v6 = vmul.f32 13.815511, %v228_v62  ;;  %v232_v18 = vld [vmem:[%s2550_s24 + $0x308] sm:$0xff] }
  0xb1   : > { %v1979_v1 = vpop.eup %1978  ;;  %1494 = vst [vmem:[%s2573_s17 + $0x278] sm:$0xff] %v1977_v61  ;;  %v739_v4 = vadd.f32 -6.9077554, %v483_v60  ;;  %1996 = vpow2.f32 %v1081_v56  ;;  %v485_v7 = vmul.f32 13.815511, %v229_v63  ;;  %v233_v19 = vld [vmem:[%s2550_s24 + $0x310] sm:$0xff] }
  0xb2   : > { %v1981_v5 = vpop.eup %1980  ;;  %1495 = vst [vmem:[%s2573_s17 + $0x280] sm:$0xff] %v1979_v1  ;;  %v486_v8 = vmul.f32 13.815511, %v230_v0  ;;  %v1083_v10 = vmul.f32 1.442695, %v737_v2  ;;  %v234_v28 = vld [vmem:[%s2550_s24 + $0x318] sm:$0xff] }
  0xb3   : > { %v1983_v9 = vpop.eup %1982  ;;  %1496 = vst [vmem:[%s2573_s17 + $0x288] sm:$0xff] %v1981_v5  ;;  %v1085_v11 = vmul.f32 1.442695, %v738_v3  ;;  %v1087_v12 = vmul.f32 1.442695, %v739_v4  ;;  %v235_v29 = vld [vmem:[%s2550_s24 + $0x320] sm:$0xff] }
  0xb4   : > { %v1985_v13 = vpop.eup %1984  ;;  %1497 = vst [vmem:[%s2573_s17 + $0x290] sm:$0xff] %v1983_v9  ;;  %v740_v14 = vadd.f32 -6.9077554, %v484_v6  ;;  %v741_v15 = vadd.f32 -6.9077554, %v485_v7  ;;  %1998 = vpow2.f32 %v1083_v10  ;;  %v236_v30 = vld [vmem:[%s2550_s24 + $0x328] sm:$0xff] }
  0xb5   : > { %v742_v16 = vadd.f32 -6.9077554, %v486_v8  ;;  %1498 = vst [vmem:[%s2573_s17 + $0x298] sm:$0xff] %v1985_v13  ;;  %2000 = vpow2.f32 %v1085_v11  ;;  %v487_v24 = vmul.f32 13.815511, %v231_v17  ;;  %v237_v47 = vld [vmem:[%s2550_s24 + $0x330] sm:$0xff] }
  0xb6   : > { %v1089_v20 = vmul.f32 1.442695, %v740_v14  ;;  %v1091_v21 = vmul.f32 1.442695, %v741_v15  ;;  %v1987_v23 = vpop.eup %1986  ;;  %2002 = vpow2.f32 %v1087_v12  ;;  %v488_v25 = vmul.f32 13.815511, %v232_v18 }
  0xb7   : > { %v1093_v22 = vmul.f32 1.442695, %v742_v16  ;;  %v489_v26 = vmul.f32 13.815511, %v233_v19  ;;  %v1989_v27 = vpop.eup %1988  ;;  %1499 = vst [vmem:[%s2573_s17 + $0x2a0] sm:$0xff] %v1987_v23  ;;  %v238_v48 = vld [vmem:[%s2550_s24 + $0x338] sm:$0xff] }
  0xb8   : > { %2004 = vpow2.f32 %v1089_v20  ;;  %v1991_v31 = vpop.eup %1990  ;;  %1500 = vst [vmem:[%s2573_s17 + $0x2a8] sm:$0xff] %v1989_v27  ;;  %v743_v32 = vadd.f32 -6.9077554, %v487_v24  ;;  %v744_v33 = vadd.f32 -6.9077554, %v488_v25  ;;  %v239_v49 = vld [vmem:[%s2550_s24 + $0x340] sm:$0xff] }
  0xb9   : > { %2006 = vpow2.f32 %v1091_v21  ;;  %v745_v34 = vadd.f32 -6.9077554, %v489_v26  ;;  %v1993_v35 = vpop.eup %1992  ;;  %1501 = vst [vmem:[%s2573_s17 + $0x2b0] sm:$0xff] %v1991_v31  ;;  %v490_v36 = vmul.f32 13.815511, %v234_v28  ;;  %v240_v58 = vld [vmem:[%s2550_s24 + $0x348] sm:$0xff] }
  0xba   : > { %2008 = vpow2.f32 %v1093_v22  ;;  %v491_v37 = vmul.f32 13.815511, %v235_v29  ;;  %v492_v38 = vmul.f32 13.815511, %v236_v30  ;;  %v1995_v39 = vpop.eup %1994  ;;  %1502 = vst [vmem:[%s2573_s17 + $0x2b8] sm:$0xff] %v1993_v35  ;;  %v241_v59 = vld [vmem:[%s2550_s24 + $0x350] sm:$0xff] }
  0xbb   : > { %v1095_v40 = vmul.f32 1.442695, %v743_v32  ;;  %v1097_v41 = vmul.f32 1.442695, %v744_v33  ;;  %v1099_v42 = vmul.f32 1.442695, %v745_v34  ;;  %v1997_v43 = vpop.eup %1996 }
  0xbc   : > { %1503 = vst [vmem:[%s2573_s17 + $0x2c0] sm:$0xff] %v1995_v39  ;;  %v746_v44 = vadd.f32 -6.9077554, %v490_v36  ;;  %v747_v45 = vadd.f32 -6.9077554, %v491_v37  ;;  %1504 = vst [vmem:[%s2573_s17 + $0x2c8] sm:$0xff] %v1997_v43 }
  0xbd   : > { %v748_v46 = vadd.f32 -6.9077554, %v492_v38  ;;  %2010 = vpow2.f32 %v1095_v40  ;;  %v493_v54 = vmul.f32 13.815511, %v237_v47  ;;  %v494_v55 = vmul.f32 13.815511, %v238_v48 }
  0xbe   : > { %2012 = vpow2.f32 %v1097_v41  ;;  %v1101_v50 = vmul.f32 1.442695, %v746_v44  ;;  %v1103_v51 = vmul.f32 1.442695, %v747_v45  ;;  %v1999_v53 = vpop.eup %1998  ;;  %v495_v56 = vmul.f32 13.815511, %v239_v49 }
  0xbf   : > { %v1105_v52 = vmul.f32 1.442695, %v748_v46  ;;  %2014 = vpow2.f32 %v1099_v42  ;;  %v2001_v57 = vpop.eup %2000  ;;  %1505 = vst [vmem:[%s2573_s17 + $0x2d0] sm:$0xff] %v1999_v53  ;;  %v242_v60 = vld [vmem:[%s2550_s24 + $0x358] sm:$0xff]  ;;  %v749_v62 = vadd.f32 -6.9077554, %v493_v54 }
  0xc0   : > { %2016 = vpow2.f32 %v1101_v50  ;;  %v2003_v61 = vpop.eup %2002  ;;  %1506 = vst [vmem:[%s2573_s17 + $0x2d8] sm:$0xff] %v2001_v57  ;;  %v750_v63 = vadd.f32 -6.9077554, %v494_v55  ;;  %v751_v0 = vadd.f32 -6.9077554, %v495_v56  ;;  %v243_v13 = vld [vmem:[%s2550_s24 + $0x360] sm:$0xff] }
  0xc1   : > { %2018 = vpow2.f32 %v1103_v51  ;;  %1507 = vst [vmem:[%s2573_s17 + $0x2e0] sm:$0xff] %v2003_v61  ;;  %v496_v2 = vmul.f32 13.815511, %v240_v58  ;;  %v497_v3 = vmul.f32 13.815511, %v241_v59  ;;  %v244_v14 = vld [vmem:[%s2550_s24 + $0x368] sm:$0xff] }
  0xc2   : > { %v2005_v1 = vpop.eup %2004  ;;  %2020 = vpow2.f32 %v1105_v52  ;;  %v498_v4 = vmul.f32 13.815511, %v242_v60  ;;  %v1107_v6 = vmul.f32 1.442695, %v749_v62  ;;  %v1109_v7 = vmul.f32 1.442695, %v750_v63 }
  0xc3   : > { %v2007_v5 = vpop.eup %2006  ;;  %1508 = vst [vmem:[%s2573_s17 + $0x2e8] sm:$0xff] %v2005_v1  ;;  %v1111_v8 = vmul.f32 1.442695, %v751_v0  ;;  %v752_v10 = vadd.f32 -6.9077554, %v496_v2  ;;  %v245_v15 = vld [vmem:[%s2550_s24 + $0x370] sm:$0xff] }
  0xc4   : > { %v2009_v9 = vpop.eup %2008  ;;  %1509 = vst [vmem:[%s2573_s17 + $0x2f0] sm:$0xff] %v2007_v5  ;;  %v753_v11 = vadd.f32 -6.9077554, %v497_v3  ;;  %v754_v12 = vadd.f32 -6.9077554, %v498_v4  ;;  %2022 = vpow2.f32 %v1107_v6  ;;  %v246_v24 = vld [vmem:[%s2550_s24 + $0x378] sm:$0xff] }
  0xc5   : > { %1510 = vst [vmem:[%s2573_s17 + $0x2f8] sm:$0xff] %v2009_v9  ;;  %2024 = vpow2.f32 %v1109_v7  ;;  %v1113_v16 = vmul.f32 1.442695, %v752_v10  ;;  %v499_v20 = vmul.f32 13.815511, %v243_v13  ;;  %v247_v25 = vld [vmem:[%s2550_s24 + $0x380] sm:$0xff] }
  0xc6   : > { %v1115_v17 = vmul.f32 1.442695, %v753_v11  ;;  %v1117_v18 = vmul.f32 1.442695, %v754_v12  ;;  %2026 = vpow2.f32 %v1111_v8  ;;  %v500_v21 = vmul.f32 13.815511, %v244_v14 }
  0xc7   : > { %v2011_v19 = vpop.eup %2010  ;;  %v501_v22 = vmul.f32 13.815511, %v245_v15  ;;  %2028 = vpow2.f32 %v1113_v16  ;;  %v248_v26 = vld [vmem:[%s2550_s24 + $0x388] sm:$0xff]  ;;  %v755_v28 = vadd.f32 -6.9077554, %v499_v20  ;;  %v249_v43 = vld [vmem:[%s2550_s24 + $0x390] sm:$0xff] }
  0xc8   : > { %v2013_v23 = vpop.eup %2012  ;;  %1511 = vst [vmem:[%s2573_s17 + $0x300] sm:$0xff] %v2011_v19  ;;  %2030 = vpow2.f32 %v1115_v17  ;;  %v756_v29 = vadd.f32 -6.9077554, %v500_v21  ;;  %v502_v32 = vmul.f32 13.815511, %v246_v24  ;;  %v250_v44 = vld [vmem:[%s2550_s24 + $0x398] sm:$0xff] }
  0xc9   : > { %v2015_v27 = vpop.eup %2014  ;;  %1512 = vst [vmem:[%s2573_s17 + $0x308] sm:$0xff] %v2013_v23  ;;  %v757_v30 = vadd.f32 -6.9077554, %v501_v22  ;;  %2032 = vpow2.f32 %v1117_v18  ;;  %v503_v33 = vmul.f32 13.815511, %v247_v25  ;;  %v251_v45 = vld [vmem:[%s2550_s24 + $0x3a0] sm:$0xff] }
  0xca   : > { %v2017_v31 = vpop.eup %2016  ;;  %1513 = vst [vmem:[%s2573_s17 + $0x310] sm:$0xff] %v2015_v27  ;;  %v504_v34 = vmul.f32 13.815511, %v248_v26  ;;  %v1119_v36 = vmul.f32 1.442695, %v755_v28  ;;  %v252_v54 = vld [vmem:[%s2550_s24 + $0x3a8] sm:$0xff] }
  0xcb   : > { %v2019_v35 = vpop.eup %2018  ;;  %1514 = vst [vmem:[%s2573_s17 + $0x318] sm:$0xff] %v2017_v31  ;;  %v1121_v37 = vmul.f32 1.442695, %v756_v29  ;;  %v1123_v38 = vmul.f32 1.442695, %v757_v30  ;;  %v253_v55 = vld [vmem:[%s2550_s24 + $0x3b0] sm:$0xff] }
  0xcc   : > { %v2021_v39 = vpop.eup %2020  ;;  %1515 = vst [vmem:[%s2573_s17 + $0x320] sm:$0xff] %v2019_v35  ;;  %v758_v40 = vadd.f32 -6.9077554, %v502_v32  ;;  %v759_v41 = vadd.f32 -6.9077554, %v503_v33  ;;  %2034 = vpow2.f32 %v1119_v36  ;;  %v254_v56 = vld [vmem:[%s2550_s24 + $0x3b8] sm:$0xff] }
  0xcd   : > { %v760_v42 = vadd.f32 -6.9077554, %v504_v34  ;;  %1516 = vst [vmem:[%s2573_s17 + $0x328] sm:$0xff] %v2021_v39  ;;  %2036 = vpow2.f32 %v1121_v37  ;;  %v505_v50 = vmul.f32 13.815511, %v249_v43  ;;  %v255_v9 = vld [vmem:[%s2550_s24 + $0x3c0] sm:$0xff] }
  0xce   : > { %v1125_v46 = vmul.f32 1.442695, %v758_v40  ;;  %v1127_v47 = vmul.f32 1.442695, %v759_v41  ;;  %v2023_v49 = vpop.eup %2022  ;;  %2038 = vpow2.f32 %v1123_v38  ;;  %v506_v51 = vmul.f32 13.815511, %v250_v44 }
  0xcf   : > { %v1129_v48 = vmul.f32 1.442695, %v760_v42  ;;  %v507_v52 = vmul.f32 13.815511, %v251_v45  ;;  %v2025_v53 = vpop.eup %2024  ;;  %1517 = vst [vmem:[%s2573_s17 + $0x330] sm:$0xff] %v2023_v49  ;;  %v256_v10 = vld [vmem:[%s2550_s24 + $0x3c8] sm:$0xff] }
  0xd0   : > { %2040 = vpow2.f32 %v1125_v46  ;;  %v2027_v57 = vpop.eup %2026  ;;  %1518 = vst [vmem:[%s2573_s17 + $0x338] sm:$0xff] %v2025_v53  ;;  %v761_v58 = vadd.f32 -6.9077554, %v505_v50  ;;  %v762_v59 = vadd.f32 -6.9077554, %v506_v51  ;;  %v257_v11 = vld [vmem:[%s2550_s24 + $0x3d0] sm:$0xff] }
  0xd1   : > { %2042 = vpow2.f32 %v1127_v47  ;;  %v763_v60 = vadd.f32 -6.9077554, %v507_v52  ;;  %v2029_v61 = vpop.eup %2028  ;;  %1519 = vst [vmem:[%s2573_s17 + $0x340] sm:$0xff] %v2027_v57  ;;  %v508_v62 = vmul.f32 13.815511, %v252_v54  ;;  %v258_v20 = vld [vmem:[%s2550_s24 + $0x3d8] sm:$0xff] }
  0xd2   : > { %2044 = vpow2.f32 %v1129_v48  ;;  %v509_v63 = vmul.f32 13.815511, %v253_v55  ;;  %v510_v0 = vmul.f32 13.815511, %v254_v56  ;;  %v2031_v1 = vpop.eup %2030  ;;  %1520 = vst [vmem:[%s2573_s17 + $0x348] sm:$0xff] %v2029_v61  ;;  %v259_v21 = vld [vmem:[%s2550_s24 + $0x3e0] sm:$0xff] }
  0xd3   : > { %v1131_v2 = vmul.f32 1.442695, %v761_v58  ;;  %v1133_v3 = vmul.f32 1.442695, %v762_v59  ;;  %v1135_v4 = vmul.f32 1.442695, %v763_v60  ;;  %v2033_v5 = vpop.eup %2032 }
  0xd4   : > { %1521 = vst [vmem:[%s2573_s17 + $0x350] sm:$0xff] %v2031_v1  ;;  %v764_v6 = vadd.f32 -6.9077554, %v508_v62  ;;  %v765_v7 = vadd.f32 -6.9077554, %v509_v63  ;;  %1522 = vst [vmem:[%s2573_s17 + $0x358] sm:$0xff] %v2033_v5 }
  0xd5   : > { %v766_v8 = vadd.f32 -6.9077554, %v510_v0  ;;  %2046 = vpow2.f32 %v1131_v2  ;;  %v511_v16 = vmul.f32 13.815511, %v255_v9  ;;  %v512_v17 = vmul.f32 13.815511, %v256_v10 }
  0xd6   : > { %2048 = vpow2.f32 %v1133_v3  ;;  %v1137_v12 = vmul.f32 1.442695, %v764_v6  ;;  %v1139_v13 = vmul.f32 1.442695, %v765_v7  ;;  %v2035_v15 = vpop.eup %2034  ;;  %v513_v18 = vmul.f32 13.815511, %v257_v11 }
  0xd7   : > { %v1141_v14 = vmul.f32 1.442695, %v766_v8  ;;  %2050 = vpow2.f32 %v1135_v4  ;;  %v2037_v19 = vpop.eup %2036  ;;  %1523 = vst [vmem:[%s2573_s17 + $0x360] sm:$0xff] %v2035_v15  ;;  %v260_v22 = vld [vmem:[%s2550_s24 + $0x3e8] sm:$0xff]  ;;  %v767_v24 = vadd.f32 -6.9077554, %v511_v16 }
  0xd8   : > { %2052 = vpow2.f32 %v1137_v12  ;;  %v2039_v23 = vpop.eup %2038  ;;  %1524 = vst [vmem:[%s2573_s17 + $0x368] sm:$0xff] %v2037_v19  ;;  %v768_v25 = vadd.f32 -6.9077554, %v512_v17  ;;  %v769_v26 = vadd.f32 -6.9077554, %v513_v18  ;;  %v261_v39 = vld [vmem:[%s2550_s24 + $0x3f0] sm:$0xff] }
  0xd9   : > { %2054 = vpow2.f32 %v1139_v13  ;;  %1525 = vst [vmem:[%s2573_s17 + $0x370] sm:$0xff] %v2039_v23  ;;  %v514_v28 = vmul.f32 13.815511, %v258_v20  ;;  %v515_v29 = vmul.f32 13.815511, %v259_v21  ;;  %v262_v40 = vld [vmem:[%s2550_s24 + $0x3f8] sm:$0xff] }
  0xda   : > { %v2041_v27 = vpop.eup %2040  ;;  %2056 = vpow2.f32 %v1141_v14  ;;  %v516_v30 = vmul.f32 13.815511, %v260_v22  ;;  %v1143_v32 = vmul.f32 1.442695, %v767_v24  ;;  %v1145_v33 = vmul.f32 1.442695, %v768_v25 }
  0xdb   : > { %v2043_v31 = vpop.eup %2042  ;;  %1526 = vst [vmem:[%s2573_s17 + $0x378] sm:$0xff] %v2041_v27  ;;  %v1147_v34 = vmul.f32 1.442695, %v769_v26  ;;  %v770_v36 = vadd.f32 -6.9077554, %v514_v28  ;;  %v263_v41 = vld [vmem:[%s2550_s24 + $0x400] sm:$0xff] }
  0xdc   : > { %v2045_v35 = vpop.eup %2044  ;;  %1527 = vst [vmem:[%s2573_s17 + $0x380] sm:$0xff] %v2043_v31  ;;  %v771_v37 = vadd.f32 -6.9077554, %v515_v29  ;;  %v772_v38 = vadd.f32 -6.9077554, %v516_v30  ;;  %2058 = vpow2.f32 %v1143_v32  ;;  %v264_v50 = vld [vmem:[%s2550_s24 + $0x408] sm:$0xff] }
  0xdd   : > { %1528 = vst [vmem:[%s2573_s17 + $0x388] sm:$0xff] %v2045_v35  ;;  %2060 = vpow2.f32 %v1145_v33  ;;  %v1149_v42 = vmul.f32 1.442695, %v770_v36  ;;  %v517_v46 = vmul.f32 13.815511, %v261_v39  ;;  %v265_v51 = vld [vmem:[%s2550_s24 + $0x410] sm:$0xff] }
  0xde   : > { %v1151_v43 = vmul.f32 1.442695, %v771_v37  ;;  %v1153_v44 = vmul.f32 1.442695, %v772_v38  ;;  %2062 = vpow2.f32 %v1147_v34  ;;  %v518_v47 = vmul.f32 13.815511, %v262_v40 }
  0xdf   : > { %v2047_v45 = vpop.eup %2046  ;;  %v519_v48 = vmul.f32 13.815511, %v263_v41  ;;  %2064 = vpow2.f32 %v1149_v42  ;;  %v266_v52 = vld [vmem:[%s2550_s24 + $0x418] sm:$0xff]  ;;  %v773_v54 = vadd.f32 -6.9077554, %v517_v46  ;;  %v267_v5 = vld [vmem:[%s2550_s24 + $0x420] sm:$0xff] }
  0xe0   : > { %v2049_v49 = vpop.eup %2048  ;;  %1529 = vst [vmem:[%s2573_s17 + $0x390] sm:$0xff] %v2047_v45  ;;  %2066 = vpow2.f32 %v1151_v43  ;;  %v774_v55 = vadd.f32 -6.9077554, %v518_v47  ;;  %v520_v58 = vmul.f32 13.815511, %v264_v50  ;;  %v268_v6 = vld [vmem:[%s2550_s24 + $0x428] sm:$0xff] }
  0xe1   : > { %v2051_v53 = vpop.eup %2050  ;;  %1530 = vst [vmem:[%s2573_s17 + $0x398] sm:$0xff] %v2049_v49  ;;  %v775_v56 = vadd.f32 -6.9077554, %v519_v48  ;;  %2068 = vpow2.f32 %v1153_v44  ;;  %v521_v59 = vmul.f32 13.815511, %v265_v51  ;;  %v269_v7 = vld [vmem:[%s2550_s24 + $0x430] sm:$0xff] }
  0xe2   : > { %v2053_v57 = vpop.eup %2052  ;;  %1531 = vst [vmem:[%s2573_s17 + $0x3a0] sm:$0xff] %v2051_v53  ;;  %v522_v60 = vmul.f32 13.815511, %v266_v52  ;;  %v1155_v62 = vmul.f32 1.442695, %v773_v54  ;;  %v270_v16 = vld [vmem:[%s2550_s24 + $0x438] sm:$0xff] }
  0xe3   : > { %v2055_v61 = vpop.eup %2054  ;;  %1532 = vst [vmem:[%s2573_s17 + $0x3a8] sm:$0xff] %v2053_v57  ;;  %v1157_v63 = vmul.f32 1.442695, %v774_v55  ;;  %v1159_v0 = vmul.f32 1.442695, %v775_v56  ;;  %v271_v17 = vld [vmem:[%s2550_s24 + $0x440] sm:$0xff] }
  0xe4   : > { %v2057_v1 = vpop.eup %2056  ;;  %1533 = vst [vmem:[%s2573_s17 + $0x3b0] sm:$0xff] %v2055_v61  ;;  %v776_v2 = vadd.f32 -6.9077554, %v520_v58  ;;  %v777_v3 = vadd.f32 -6.9077554, %v521_v59  ;;  %2070 = vpow2.f32 %v1155_v62  ;;  %v272_v18 = vld [vmem:[%s2550_s24 + $0x448] sm:$0xff] }
  0xe5   : > { %v778_v4 = vadd.f32 -6.9077554, %v522_v60  ;;  %1534 = vst [vmem:[%s2573_s17 + $0x3b8] sm:$0xff] %v2057_v1  ;;  %2072 = vpow2.f32 %v1157_v63  ;;  %v523_v12 = vmul.f32 13.815511, %v267_v5  ;;  %v273_v35 = vld [vmem:[%s2550_s24 + $0x450] sm:$0xff] }
  0xe6   : > { %v1161_v8 = vmul.f32 1.442695, %v776_v2  ;;  %v1163_v9 = vmul.f32 1.442695, %v777_v3  ;;  %v2059_v11 = vpop.eup %2058  ;;  %2074 = vpow2.f32 %v1159_v0  ;;  %v524_v13 = vmul.f32 13.815511, %v268_v6 }
  0xe7   : > { %v1165_v10 = vmul.f32 1.442695, %v778_v4  ;;  %v525_v14 = vmul.f32 13.815511, %v269_v7  ;;  %v2061_v15 = vpop.eup %2060  ;;  %1535 = vst [vmem:[%s2573_s17 + $0x3c0] sm:$0xff] %v2059_v11  ;;  %v274_v36 = vld [vmem:[%s2550_s24 + $0x458] sm:$0xff] }
  0xe8   : > { %2076 = vpow2.f32 %v1161_v8  ;;  %v2063_v19 = vpop.eup %2062  ;;  %1536 = vst [vmem:[%s2573_s17 + $0x3c8] sm:$0xff] %v2061_v15  ;;  %v779_v20 = vadd.f32 -6.9077554, %v523_v12  ;;  %v780_v21 = vadd.f32 -6.9077554, %v524_v13  ;;  %v275_v37 = vld [vmem:[%s2550_s24 + $0x460] sm:$0xff] }
  0xe9   : > { %2078 = vpow2.f32 %v1163_v9  ;;  %v781_v22 = vadd.f32 -6.9077554, %v525_v14  ;;  %v2065_v23 = vpop.eup %2064  ;;  %1537 = vst [vmem:[%s2573_s17 + $0x3d0] sm:$0xff] %v2063_v19  ;;  %v526_v24 = vmul.f32 13.815511, %v270_v16  ;;  %v276_v46 = vld [vmem:[%s2550_s24 + $0x468] sm:$0xff] }
  0xea   : > { %2080 = vpow2.f32 %v1165_v10  ;;  %v527_v25 = vmul.f32 13.815511, %v271_v17  ;;  %v528_v26 = vmul.f32 13.815511, %v272_v18  ;;  %v2067_v27 = vpop.eup %2066  ;;  %1538 = vst [vmem:[%s2573_s17 + $0x3d8] sm:$0xff] %v2065_v23  ;;  %v277_v47 = vld [vmem:[%s2550_s24 + $0x470] sm:$0xff] }
  0xeb   : > { %v1167_v28 = vmul.f32 1.442695, %v779_v20  ;;  %v1169_v29 = vmul.f32 1.442695, %v780_v21  ;;  %v1171_v30 = vmul.f32 1.442695, %v781_v22  ;;  %v2069_v31 = vpop.eup %2068 }
  0xec   : > { %1539 = vst [vmem:[%s2573_s17 + $0x3e0] sm:$0xff] %v2067_v27  ;;  %v782_v32 = vadd.f32 -6.9077554, %v526_v24  ;;  %v783_v33 = vadd.f32 -6.9077554, %v527_v25  ;;  %1540 = vst [vmem:[%s2573_s17 + $0x3e8] sm:$0xff] %v2069_v31 }
  0xed   : > { %v784_v34 = vadd.f32 -6.9077554, %v528_v26  ;;  %2082 = vpow2.f32 %v1167_v28  ;;  %v529_v42 = vmul.f32 13.815511, %v273_v35  ;;  %v530_v43 = vmul.f32 13.815511, %v274_v36 }
  0xee   : > { %2084 = vpow2.f32 %v1169_v29  ;;  %v1173_v38 = vmul.f32 1.442695, %v782_v32  ;;  %v1175_v39 = vmul.f32 1.442695, %v783_v33  ;;  %v2071_v41 = vpop.eup %2070  ;;  %v531_v44 = vmul.f32 13.815511, %v275_v37 }
  0xef   : > { %v1177_v40 = vmul.f32 1.442695, %v784_v34  ;;  %2086 = vpow2.f32 %v1171_v30  ;;  %v2073_v45 = vpop.eup %2072  ;;  %1541 = vst [vmem:[%s2573_s17 + $0x3f0] sm:$0xff] %v2071_v41  ;;  %v278_v48 = vld [vmem:[%s2550_s24 + $0x478] sm:$0xff]  ;;  %v785_v50 = vadd.f32 -6.9077554, %v529_v42 }
  0xf0   : > { %2088 = vpow2.f32 %v1173_v38  ;;  %v2075_v49 = vpop.eup %2074  ;;  %1542 = vst [vmem:[%s2573_s17 + $0x3f8] sm:$0xff] %v2073_v45  ;;  %v786_v51 = vadd.f32 -6.9077554, %v530_v43  ;;  %v787_v52 = vadd.f32 -6.9077554, %v531_v44  ;;  %v279_v1 = vld [vmem:[%s2550_s24 + $0x480] sm:$0xff] }
  0xf1   : > { %2090 = vpow2.f32 %v1175_v39  ;;  %1543 = vst [vmem:[%s2573_s17 + $0x400] sm:$0xff] %v2075_v49  ;;  %v532_v54 = vmul.f32 13.815511, %v276_v46  ;;  %v533_v55 = vmul.f32 13.815511, %v277_v47  ;;  %v280_v2 = vld [vmem:[%s2550_s24 + $0x488] sm:$0xff] }
  0xf2   : > { %v2077_v53 = vpop.eup %2076  ;;  %2092 = vpow2.f32 %v1177_v40  ;;  %v534_v56 = vmul.f32 13.815511, %v278_v48  ;;  %v1179_v58 = vmul.f32 1.442695, %v785_v50  ;;  %v1181_v59 = vmul.f32 1.442695, %v786_v51 }
  0xf3   : > { %v2079_v57 = vpop.eup %2078  ;;  %1544 = vst [vmem:[%s2573_s17 + $0x408] sm:$0xff] %v2077_v53  ;;  %v1183_v60 = vmul.f32 1.442695, %v787_v52  ;;  %v788_v62 = vadd.f32 -6.9077554, %v532_v54  ;;  %v281_v3 = vld [vmem:[%s2550_s24 + $0x490] sm:$0xff] }
  0xf4   : > { %v2081_v61 = vpop.eup %2080  ;;  %1545 = vst [vmem:[%s2573_s17 + $0x410] sm:$0xff] %v2079_v57  ;;  %v789_v63 = vadd.f32 -6.9077554, %v533_v55  ;;  %v790_v0 = vadd.f32 -6.9077554, %v534_v56  ;;  %2094 = vpow2.f32 %v1179_v58  ;;  %v282_v12 = vld [vmem:[%s2550_s24 + $0x498] sm:$0xff] }
  0xf5   : > { %1546 = vst [vmem:[%s2573_s17 + $0x418] sm:$0xff] %v2081_v61  ;;  %2096 = vpow2.f32 %v1181_v59  ;;  %v1185_v4 = vmul.f32 1.442695, %v788_v62  ;;  %v535_v8 = vmul.f32 13.815511, %v279_v1  ;;  %v283_v13 = vld [vmem:[%s2550_s24 + $0x4a0] sm:$0xff] }
  0xf6   : > { %v1187_v5 = vmul.f32 1.442695, %v789_v63  ;;  %v1189_v6 = vmul.f32 1.442695, %v790_v0  ;;  %2098 = vpow2.f32 %v1183_v60  ;;  %v536_v9 = vmul.f32 13.815511, %v280_v2 }
  0xf7   : > { %v2083_v7 = vpop.eup %2082  ;;  %v537_v10 = vmul.f32 13.815511, %v281_v3  ;;  %2100 = vpow2.f32 %v1185_v4  ;;  %v284_v14 = vld [vmem:[%s2550_s24 + $0x4a8] sm:$0xff]  ;;  %v791_v16 = vadd.f32 -6.9077554, %v535_v8  ;;  %v285_v31 = vld [vmem:[%s2550_s24 + $0x4b0] sm:$0xff] }
  0xf8   : > { %v2085_v11 = vpop.eup %2084  ;;  %1547 = vst [vmem:[%s2573_s17 + $0x420] sm:$0xff] %v2083_v7  ;;  %2102 = vpow2.f32 %v1187_v5  ;;  %v792_v17 = vadd.f32 -6.9077554, %v536_v9  ;;  %v538_v20 = vmul.f32 13.815511, %v282_v12  ;;  %v286_v32 = vld [vmem:[%s2550_s24 + $0x4b8] sm:$0xff] }
  0xf9   : > { %v2087_v15 = vpop.eup %2086  ;;  %1548 = vst [vmem:[%s2573_s17 + $0x428] sm:$0xff] %v2085_v11  ;;  %v793_v18 = vadd.f32 -6.9077554, %v537_v10  ;;  %2104 = vpow2.f32 %v1189_v6  ;;  %v539_v21 = vmul.f32 13.815511, %v283_v13  ;;  %v287_v33 = vld [vmem:[%s2550_s24 + $0x4c0] sm:$0xff] }
  0xfa   : > { %v2089_v19 = vpop.eup %2088  ;;  %1549 = vst [vmem:[%s2573_s17 + $0x430] sm:$0xff] %v2087_v15  ;;  %v540_v22 = vmul.f32 13.815511, %v284_v14  ;;  %v1191_v24 = vmul.f32 1.442695, %v791_v16  ;;  %v288_v42 = vld [vmem:[%s2550_s24 + $0x4c8] sm:$0xff] }
  0xfb   : > { %v2091_v23 = vpop.eup %2090  ;;  %1550 = vst [vmem:[%s2573_s17 + $0x438] sm:$0xff] %v2089_v19  ;;  %v1193_v25 = vmul.f32 1.442695, %v792_v17  ;;  %v1195_v26 = vmul.f32 1.442695, %v793_v18  ;;  %v289_v43 = vld [vmem:[%s2550_s24 + $0x4d0] sm:$0xff] }
  0xfc   : > { %v2093_v27 = vpop.eup %2092  ;;  %1551 = vst [vmem:[%s2573_s17 + $0x440] sm:$0xff] %v2091_v23  ;;  %v794_v28 = vadd.f32 -6.9077554, %v538_v20  ;;  %v795_v29 = vadd.f32 -6.9077554, %v539_v21  ;;  %2106 = vpow2.f32 %v1191_v24  ;;  %v290_v44 = vld [vmem:[%s2550_s24 + $0x4d8] sm:$0xff] }
  0xfd   : > { %v796_v30 = vadd.f32 -6.9077554, %v540_v22  ;;  %1552 = vst [vmem:[%s2573_s17 + $0x448] sm:$0xff] %v2093_v27  ;;  %2108 = vpow2.f32 %v1193_v25  ;;  %v541_v38 = vmul.f32 13.815511, %v285_v31  ;;  %v291_v61 = vld [vmem:[%s2550_s24 + $0x4e0] sm:$0xff] }
  0xfe   : > { %v1197_v34 = vmul.f32 1.442695, %v794_v28  ;;  %v1199_v35 = vmul.f32 1.442695, %v795_v29  ;;  %v2095_v37 = vpop.eup %2094  ;;  %2110 = vpow2.f32 %v1195_v26  ;;  %v542_v39 = vmul.f32 13.815511, %v286_v32 }
  0xff   : > { %v1201_v36 = vmul.f32 1.442695, %v796_v30  ;;  %v543_v40 = vmul.f32 13.815511, %v287_v33  ;;  %v2097_v41 = vpop.eup %2096  ;;  %1553 = vst [vmem:[%s2573_s17 + $0x450] sm:$0xff] %v2095_v37  ;;  %v292_v62 = vld [vmem:[%s2550_s24 + $0x4e8] sm:$0xff] }
 0x100   : > { %2112 = vpow2.f32 %v1197_v34  ;;  %v2099_v45 = vpop.eup %2098  ;;  %1554 = vst [vmem:[%s2573_s17 + $0x458] sm:$0xff] %v2097_v41  ;;  %v797_v46 = vadd.f32 -6.9077554, %v541_v38  ;;  %v798_v47 = vadd.f32 -6.9077554, %v542_v39  ;;  %v293_v63 = vld [vmem:[%s2550_s24 + $0x4f0] sm:$0xff] }
 0x101   : > { %2114 = vpow2.f32 %v1199_v35  ;;  %v799_v48 = vadd.f32 -6.9077554, %v543_v40  ;;  %v2101_v49 = vpop.eup %2100  ;;  %1555 = vst [vmem:[%s2573_s17 + $0x460] sm:$0xff] %v2099_v45  ;;  %v544_v50 = vmul.f32 13.815511, %v288_v42  ;;  %v294_v8 = vld [vmem:[%s2550_s24 + $0x4f8] sm:$0xff] }
 0x102   : > { %2116 = vpow2.f32 %v1201_v36  ;;  %v545_v51 = vmul.f32 13.815511, %v289_v43  ;;  %v546_v52 = vmul.f32 13.815511, %v290_v44  ;;  %v2103_v53 = vpop.eup %2102  ;;  %1556 = vst [vmem:[%s2573_s17 + $0x468] sm:$0xff] %v2101_v49  ;;  %v295_v9 = vld [vmem:[%s2550_s24 + $0x500] sm:$0xff] }
 0x103   : > { %v1203_v54 = vmul.f32 1.442695, %v797_v46  ;;  %v1205_v55 = vmul.f32 1.442695, %v798_v47  ;;  %v1207_v56 = vmul.f32 1.442695, %v799_v48  ;;  %v2105_v57 = vpop.eup %2104 }
 0x104   : > { %1557 = vst [vmem:[%s2573_s17 + $0x470] sm:$0xff] %v2103_v53  ;;  %v800_v58 = vadd.f32 -6.9077554, %v544_v50  ;;  %v801_v59 = vadd.f32 -6.9077554, %v545_v51  ;;  %1558 = vst [vmem:[%s2573_s17 + $0x478] sm:$0xff] %v2105_v57 }
 0x105   : > { %v802_v60 = vadd.f32 -6.9077554, %v546_v52  ;;  %2118 = vpow2.f32 %v1203_v54  ;;  %v547_v4 = vmul.f32 13.815511, %v291_v61  ;;  %v548_v5 = vmul.f32 13.815511, %v292_v62 }
 0x106   : > { %2120 = vpow2.f32 %v1205_v55  ;;  %v1209_v0 = vmul.f32 1.442695, %v800_v58  ;;  %v1211_v1 = vmul.f32 1.442695, %v801_v59  ;;  %v2107_v3 = vpop.eup %2106  ;;  %v549_v6 = vmul.f32 13.815511, %v293_v63 }
 0x107   : > { %v1213_v2 = vmul.f32 1.442695, %v802_v60  ;;  %2122 = vpow2.f32 %v1207_v56  ;;  %v2109_v7 = vpop.eup %2108  ;;  %1559 = vst [vmem:[%s2573_s17 + $0x480] sm:$0xff] %v2107_v3  ;;  %v296_v10 = vld [vmem:[%s2550_s24 + $0x508] sm:$0xff]  ;;  %v803_v12 = vadd.f32 -6.9077554, %v547_v4 }
 0x108   : > { %2124 = vpow2.f32 %v1209_v0  ;;  %v2111_v11 = vpop.eup %2110  ;;  %1560 = vst [vmem:[%s2573_s17 + $0x488] sm:$0xff] %v2109_v7  ;;  %v804_v13 = vadd.f32 -6.9077554, %v548_v5  ;;  %v805_v14 = vadd.f32 -6.9077554, %v549_v6  ;;  %v297_v27 = vld [vmem:[%s2550_s24 + $0x510] sm:$0xff] }
 0x109   : > { %2126 = vpow2.f32 %v1211_v1  ;;  %1561 = vst [vmem:[%s2573_s17 + $0x490] sm:$0xff] %v2111_v11  ;;  %v550_v16 = vmul.f32 13.815511, %v294_v8  ;;  %v551_v17 = vmul.f32 13.815511, %v295_v9  ;;  %v298_v28 = vld [vmem:[%s2550_s24 + $0x518] sm:$0xff] }
 0x10a   : > { %v2113_v15 = vpop.eup %2112  ;;  %2128 = vpow2.f32 %v1213_v2  ;;  %v552_v18 = vmul.f32 13.815511, %v296_v10  ;;  %v1215_v20 = vmul.f32 1.442695, %v803_v12  ;;  %v1217_v21 = vmul.f32 1.442695, %v804_v13 }
 0x10b   : > { %v2115_v19 = vpop.eup %2114  ;;  %1562 = vst [vmem:[%s2573_s17 + $0x498] sm:$0xff] %v2113_v15  ;;  %v1219_v22 = vmul.f32 1.442695, %v805_v14  ;;  %v806_v24 = vadd.f32 -6.9077554, %v550_v16  ;;  %v299_v29 = vld [vmem:[%s2550_s24 + $0x520] sm:$0xff] }
 0x10c   : > { %v2117_v23 = vpop.eup %2116  ;;  %1563 = vst [vmem:[%s2573_s17 + $0x4a0] sm:$0xff] %v2115_v19  ;;  %v807_v25 = vadd.f32 -6.9077554, %v551_v17  ;;  %v808_v26 = vadd.f32 -6.9077554, %v552_v18  ;;  %2130 = vpow2.f32 %v1215_v20  ;;  %v300_v38 = vld [vmem:[%s2550_s24 + $0x528] sm:$0xff] }
 0x10d   : > { %1564 = vst [vmem:[%s2573_s17 + $0x4a8] sm:$0xff] %v2117_v23  ;;  %2132 = vpow2.f32 %v1217_v21  ;;  %v1221_v30 = vmul.f32 1.442695, %v806_v24  ;;  %v553_v34 = vmul.f32 13.815511, %v297_v27  ;;  %v301_v39 = vld [vmem:[%s2550_s24 + $0x530] sm:$0xff] }
 0x10e   : > { %v1223_v31 = vmul.f32 1.442695, %v807_v25  ;;  %v1225_v32 = vmul.f32 1.442695, %v808_v26  ;;  %2134 = vpow2.f32 %v1219_v22  ;;  %v554_v35 = vmul.f32 13.815511, %v298_v28 }
 0x10f   : > { %v2119_v33 = vpop.eup %2118  ;;  %v555_v36 = vmul.f32 13.815511, %v299_v29  ;;  %2136 = vpow2.f32 %v1221_v30  ;;  %v302_v40 = vld [vmem:[%s2550_s24 + $0x538] sm:$0xff]  ;;  %v809_v42 = vadd.f32 -6.9077554, %v553_v34  ;;  %v303_v57 = vld [vmem:[%s2550_s24 + $0x540] sm:$0xff] }
 0x110   : > { %v2121_v37 = vpop.eup %2120  ;;  %1565 = vst [vmem:[%s2573_s17 + $0x4b0] sm:$0xff] %v2119_v33  ;;  %2138 = vpow2.f32 %v1223_v31  ;;  %v810_v43 = vadd.f32 -6.9077554, %v554_v35  ;;  %v556_v46 = vmul.f32 13.815511, %v300_v38  ;;  %v304_v58 = vld [vmem:[%s2550_s24 + $0x548] sm:$0xff] }
 0x111   : > { %v2123_v41 = vpop.eup %2122  ;;  %1566 = vst [vmem:[%s2573_s17 + $0x4b8] sm:$0xff] %v2121_v37  ;;  %v811_v44 = vadd.f32 -6.9077554, %v555_v36  ;;  %2140 = vpow2.f32 %v1225_v32  ;;  %v557_v47 = vmul.f32 13.815511, %v301_v39  ;;  %v305_v59 = vld [vmem:[%s2550_s24 + $0x550] sm:$0xff] }
 0x112   : > { %v2125_v45 = vpop.eup %2124  ;;  %1567 = vst [vmem:[%s2573_s17 + $0x4c0] sm:$0xff] %v2123_v41  ;;  %v558_v48 = vmul.f32 13.815511, %v302_v40  ;;  %v1227_v50 = vmul.f32 1.442695, %v809_v42  ;;  %v306_v4 = vld [vmem:[%s2550_s24 + $0x558] sm:$0xff] }
 0x113   : > { %v2127_v49 = vpop.eup %2126  ;;  %1568 = vst [vmem:[%s2573_s17 + $0x4c8] sm:$0xff] %v2125_v45  ;;  %v1229_v51 = vmul.f32 1.442695, %v810_v43  ;;  %v1231_v52 = vmul.f32 1.442695, %v811_v44  ;;  %v307_v5 = vld [vmem:[%s2550_s24 + $0x560] sm:$0xff] }
 0x114   : > { %v2129_v53 = vpop.eup %2128  ;;  %1569 = vst [vmem:[%s2573_s17 + $0x4d0] sm:$0xff] %v2127_v49  ;;  %v812_v54 = vadd.f32 -6.9077554, %v556_v46  ;;  %v813_v55 = vadd.f32 -6.9077554, %v557_v47  ;;  %2142 = vpow2.f32 %v1227_v50  ;;  %v308_v6 = vld [vmem:[%s2550_s24 + $0x568] sm:$0xff] }
 0x115   : > { %v814_v56 = vadd.f32 -6.9077554, %v558_v48  ;;  %1570 = vst [vmem:[%s2573_s17 + $0x4d8] sm:$0xff] %v2129_v53  ;;  %2144 = vpow2.f32 %v1229_v51  ;;  %v559_v0 = vmul.f32 13.815511, %v303_v57  ;;  %v309_v23 = vld [vmem:[%s2550_s24 + $0x570] sm:$0xff] }
 0x116   : > { %v1233_v60 = vmul.f32 1.442695, %v812_v54  ;;  %v1235_v61 = vmul.f32 1.442695, %v813_v55  ;;  %v2131_v63 = vpop.eup %2130  ;;  %2146 = vpow2.f32 %v1231_v52  ;;  %v560_v1 = vmul.f32 13.815511, %v304_v58 }
 0x117   : > { %v1237_v62 = vmul.f32 1.442695, %v814_v56  ;;  %v561_v2 = vmul.f32 13.815511, %v305_v59  ;;  %v2133_v3 = vpop.eup %2132  ;;  %1571 = vst [vmem:[%s2573_s17 + $0x4e0] sm:$0xff] %v2131_v63  ;;  %v310_v24 = vld [vmem:[%s2550_s24 + $0x578] sm:$0xff] }
 0x118   : > { %2148 = vpow2.f32 %v1233_v60  ;;  %v2135_v7 = vpop.eup %2134  ;;  %1572 = vst [vmem:[%s2573_s17 + $0x4e8] sm:$0xff] %v2133_v3  ;;  %v815_v8 = vadd.f32 -6.9077554, %v559_v0  ;;  %v816_v9 = vadd.f32 -6.9077554, %v560_v1  ;;  %v311_v25 = vld [vmem:[%s2550_s24 + $0x580] sm:$0xff] }
 0x119   : > { %2150 = vpow2.f32 %v1235_v61  ;;  %v817_v10 = vadd.f32 -6.9077554, %v561_v2  ;;  %v2137_v11 = vpop.eup %2136  ;;  %1573 = vst [vmem:[%s2573_s17 + $0x4f0] sm:$0xff] %v2135_v7  ;;  %v562_v12 = vmul.f32 13.815511, %v306_v4  ;;  %v312_v34 = vld [vmem:[%s2550_s24 + $0x588] sm:$0xff] }
 0x11a   : > { %2152 = vpow2.f32 %v1237_v62  ;;  %v563_v13 = vmul.f32 13.815511, %v307_v5  ;;  %v564_v14 = vmul.f32 13.815511, %v308_v6  ;;  %v2139_v15 = vpop.eup %2138  ;;  %1574 = vst [vmem:[%s2573_s17 + $0x4f8] sm:$0xff] %v2137_v11  ;;  %v313_v35 = vld [vmem:[%s2550_s24 + $0x590] sm:$0xff] }
 0x11b   : > { %v1239_v16 = vmul.f32 1.442695, %v815_v8  ;;  %v1241_v17 = vmul.f32 1.442695, %v816_v9  ;;  %v1243_v18 = vmul.f32 1.442695, %v817_v10  ;;  %v2141_v19 = vpop.eup %2140 }
 0x11c   : > { %1575 = vst [vmem:[%s2573_s17 + $0x500] sm:$0xff] %v2139_v15  ;;  %v818_v20 = vadd.f32 -6.9077554, %v562_v12  ;;  %v819_v21 = vadd.f32 -6.9077554, %v563_v13  ;;  %1576 = vst [vmem:[%s2573_s17 + $0x508] sm:$0xff] %v2141_v19 }
 0x11d   : > { %v820_v22 = vadd.f32 -6.9077554, %v564_v14  ;;  %2154 = vpow2.f32 %v1239_v16  ;;  %v565_v30 = vmul.f32 13.815511, %v309_v23  ;;  %v566_v31 = vmul.f32 13.815511, %v310_v24 }
 0x11e   : > { %2156 = vpow2.f32 %v1241_v17  ;;  %v1245_v26 = vmul.f32 1.442695, %v818_v20  ;;  %v1247_v27 = vmul.f32 1.442695, %v819_v21  ;;  %v2143_v29 = vpop.eup %2142  ;;  %v567_v32 = vmul.f32 13.815511, %v311_v25 }
 0x11f   : > { %v1249_v28 = vmul.f32 1.442695, %v820_v22  ;;  %2158 = vpow2.f32 %v1243_v18  ;;  %v2145_v33 = vpop.eup %2144  ;;  %1577 = vst [vmem:[%s2573_s17 + $0x510] sm:$0xff] %v2143_v29  ;;  %v314_v36 = vld [vmem:[%s2550_s24 + $0x598] sm:$0xff]  ;;  %v821_v38 = vadd.f32 -6.9077554, %v565_v30 }
 0x120   : > { %2160 = vpow2.f32 %v1245_v26  ;;  %v2147_v37 = vpop.eup %2146  ;;  %1578 = vst [vmem:[%s2573_s17 + $0x518] sm:$0xff] %v2145_v33  ;;  %v822_v39 = vadd.f32 -6.9077554, %v566_v31  ;;  %v823_v40 = vadd.f32 -6.9077554, %v567_v32  ;;  %v315_v53 = vld [vmem:[%s2550_s24 + $0x5a0] sm:$0xff] }
 0x121   : > { %2162 = vpow2.f32 %v1247_v27  ;;  %1579 = vst [vmem:[%s2573_s17 + $0x520] sm:$0xff] %v2147_v37  ;;  %v568_v42 = vmul.f32 13.815511, %v312_v34  ;;  %v569_v43 = vmul.f32 13.815511, %v313_v35  ;;  %v316_v54 = vld [vmem:[%s2550_s24 + $0x5a8] sm:$0xff] }
 0x122   : > { %v2149_v41 = vpop.eup %2148  ;;  %2164 = vpow2.f32 %v1249_v28  ;;  %v570_v44 = vmul.f32 13.815511, %v314_v36  ;;  %v1251_v46 = vmul.f32 1.442695, %v821_v38  ;;  %v1253_v47 = vmul.f32 1.442695, %v822_v39 }
 0x123   : > { %v2151_v45 = vpop.eup %2150  ;;  %1580 = vst [vmem:[%s2573_s17 + $0x528] sm:$0xff] %v2149_v41  ;;  %v1255_v48 = vmul.f32 1.442695, %v823_v40  ;;  %v824_v50 = vadd.f32 -6.9077554, %v568_v42  ;;  %v317_v55 = vld [vmem:[%s2550_s24 + $0x5b0] sm:$0xff] }
 0x124   : > { %v2153_v49 = vpop.eup %2152  ;;  %1581 = vst [vmem:[%s2573_s17 + $0x530] sm:$0xff] %v2151_v45  ;;  %v825_v51 = vadd.f32 -6.9077554, %v569_v43  ;;  %v826_v52 = vadd.f32 -6.9077554, %v570_v44  ;;  %2166 = vpow2.f32 %v1251_v46  ;;  %v318_v0 = vld [vmem:[%s2550_s24 + $0x5b8] sm:$0xff] }
 0x125   : > { %1582 = vst [vmem:[%s2573_s17 + $0x538] sm:$0xff] %v2153_v49  ;;  %2168 = vpow2.f32 %v1253_v47  ;;  %v1257_v56 = vmul.f32 1.442695, %v824_v50  ;;  %v571_v60 = vmul.f32 13.815511, %v315_v53  ;;  %v319_v1 = vld [vmem:[%s2550_s24 + $0x5c0] sm:$0xff] }
 0x126   : > { %v1259_v57 = vmul.f32 1.442695, %v825_v51  ;;  %v1261_v58 = vmul.f32 1.442695, %v826_v52  ;;  %2170 = vpow2.f32 %v1255_v48  ;;  %v572_v61 = vmul.f32 13.815511, %v316_v54 }
 0x127   : > { %v2155_v59 = vpop.eup %2154  ;;  %v573_v62 = vmul.f32 13.815511, %v317_v55  ;;  %2172 = vpow2.f32 %v1257_v56  ;;  %v320_v2 = vld [vmem:[%s2550_s24 + $0x5c8] sm:$0xff]  ;;  %v827_v4 = vadd.f32 -6.9077554, %v571_v60  ;;  %v321_v19 = vld [vmem:[%s2550_s24 + $0x5d0] sm:$0xff] }
 0x128   : > { %v2157_v63 = vpop.eup %2156  ;;  %1583 = vst [vmem:[%s2573_s17 + $0x540] sm:$0xff] %v2155_v59  ;;  %2174 = vpow2.f32 %v1259_v57  ;;  %v828_v5 = vadd.f32 -6.9077554, %v572_v61  ;;  %v574_v8 = vmul.f32 13.815511, %v318_v0  ;;  %v322_v20 = vld [vmem:[%s2550_s24 + $0x5d8] sm:$0xff] }
 0x129   : > { %v2159_v3 = vpop.eup %2158  ;;  %1584 = vst [vmem:[%s2573_s17 + $0x548] sm:$0xff] %v2157_v63  ;;  %v829_v6 = vadd.f32 -6.9077554, %v573_v62  ;;  %2176 = vpow2.f32 %v1261_v58  ;;  %v575_v9 = vmul.f32 13.815511, %v319_v1  ;;  %v323_v21 = vld [vmem:[%s2550_s24 + $0x5e0] sm:$0xff] }
 0x12a   : > { %v2161_v7 = vpop.eup %2160  ;;  %1585 = vst [vmem:[%s2573_s17 + $0x550] sm:$0xff] %v2159_v3  ;;  %v576_v10 = vmul.f32 13.815511, %v320_v2  ;;  %v1263_v12 = vmul.f32 1.442695, %v827_v4  ;;  %v324_v30 = vld [vmem:[%s2550_s24 + $0x5e8] sm:$0xff] }
 0x12b   : > { %v2163_v11 = vpop.eup %2162  ;;  %1586 = vst [vmem:[%s2573_s17 + $0x558] sm:$0xff] %v2161_v7  ;;  %v1265_v13 = vmul.f32 1.442695, %v828_v5  ;;  %v1267_v14 = vmul.f32 1.442695, %v829_v6  ;;  %v325_v31 = vld [vmem:[%s2550_s24 + $0x5f0] sm:$0xff] }
 0x12c   : > { %v2165_v15 = vpop.eup %2164  ;;  %1587 = vst [vmem:[%s2573_s17 + $0x560] sm:$0xff] %v2163_v11  ;;  %v830_v16 = vadd.f32 -6.9077554, %v574_v8  ;;  %v831_v17 = vadd.f32 -6.9077554, %v575_v9  ;;  %2178 = vpow2.f32 %v1263_v12  ;;  %v326_v32 = vld [vmem:[%s2550_s24 + $0x5f8] sm:$0xff] }
 0x12d   : > { %v832_v18 = vadd.f32 -6.9077554, %v576_v10  ;;  %1588 = vst [vmem:[%s2573_s17 + $0x568] sm:$0xff] %v2165_v15  ;;  %2180 = vpow2.f32 %v1265_v13  ;;  %v577_v26 = vmul.f32 13.815511, %v321_v19  ;;  %v327_v49 = vld [vmem:[%s2550_s24 + $0x600] sm:$0xff] }
 0x12e   : > { %v1269_v22 = vmul.f32 1.442695, %v830_v16  ;;  %v1271_v23 = vmul.f32 1.442695, %v831_v17  ;;  %v2167_v25 = vpop.eup %2166  ;;  %2182 = vpow2.f32 %v1267_v14  ;;  %v578_v27 = vmul.f32 13.815511, %v322_v20 }
 0x12f   : > { %v1273_v24 = vmul.f32 1.442695, %v832_v18  ;;  %v579_v28 = vmul.f32 13.815511, %v323_v21  ;;  %v2169_v29 = vpop.eup %2168  ;;  %1589 = vst [vmem:[%s2573_s17 + $0x570] sm:$0xff] %v2167_v25  ;;  %v328_v50 = vld [vmem:[%s2550_s24 + $0x608] sm:$0xff] }
 0x130   : > { %2184 = vpow2.f32 %v1269_v22  ;;  %v2171_v33 = vpop.eup %2170  ;;  %1590 = vst [vmem:[%s2573_s17 + $0x578] sm:$0xff] %v2169_v29  ;;  %v833_v34 = vadd.f32 -6.9077554, %v577_v26  ;;  %v834_v35 = vadd.f32 -6.9077554, %v578_v27  ;;  %v329_v51 = vld [vmem:[%s2550_s24 + $0x610] sm:$0xff] }
 0x131   : > { %2186 = vpow2.f32 %v1271_v23  ;;  %v835_v36 = vadd.f32 -6.9077554, %v579_v28  ;;  %v2173_v37 = vpop.eup %2172  ;;  %1591 = vst [vmem:[%s2573_s17 + $0x580] sm:$0xff] %v2171_v33  ;;  %v580_v38 = vmul.f32 13.815511, %v324_v30  ;;  %v330_v60 = vld [vmem:[%s2550_s24 + $0x618] sm:$0xff] }
 0x132   : > { %2188 = vpow2.f32 %v1273_v24  ;;  %v581_v39 = vmul.f32 13.815511, %v325_v31  ;;  %v582_v40 = vmul.f32 13.815511, %v326_v32  ;;  %v2175_v41 = vpop.eup %2174  ;;  %1592 = vst [vmem:[%s2573_s17 + $0x588] sm:$0xff] %v2173_v37  ;;  %v331_v61 = vld [vmem:[%s2550_s24 + $0x620] sm:$0xff] }
 0x133   : > { %v1275_v42 = vmul.f32 1.442695, %v833_v34  ;;  %v1277_v43 = vmul.f32 1.442695, %v834_v35  ;;  %v1279_v44 = vmul.f32 1.442695, %v835_v36  ;;  %v2177_v45 = vpop.eup %2176 }
 0x134   : > { %1593 = vst [vmem:[%s2573_s17 + $0x590] sm:$0xff] %v2175_v41  ;;  %v836_v46 = vadd.f32 -6.9077554, %v580_v38  ;;  %v837_v47 = vadd.f32 -6.9077554, %v581_v39  ;;  %1594 = vst [vmem:[%s2573_s17 + $0x598] sm:$0xff] %v2177_v45 }
 0x135   : > { %v838_v48 = vadd.f32 -6.9077554, %v582_v40  ;;  %2190 = vpow2.f32 %v1275_v42  ;;  %v583_v56 = vmul.f32 13.815511, %v327_v49  ;;  %v584_v57 = vmul.f32 13.815511, %v328_v50 }
 0x136   : > { %2192 = vpow2.f32 %v1277_v43  ;;  %v1281_v52 = vmul.f32 1.442695, %v836_v46  ;;  %v1283_v53 = vmul.f32 1.442695, %v837_v47  ;;  %v2179_v55 = vpop.eup %2178  ;;  %v585_v58 = vmul.f32 13.815511, %v329_v51 }
 0x137   : > { %v1285_v54 = vmul.f32 1.442695, %v838_v48  ;;  %2194 = vpow2.f32 %v1279_v44  ;;  %v2181_v59 = vpop.eup %2180  ;;  %1595 = vst [vmem:[%s2573_s17 + $0x5a0] sm:$0xff] %v2179_v55  ;;  %v332_v62 = vld [vmem:[%s2550_s24 + $0x628] sm:$0xff]  ;;  %v839_v0 = vadd.f32 -6.9077554, %v583_v56 }
 0x138   : > { %2196 = vpow2.f32 %v1281_v52  ;;  %v2183_v63 = vpop.eup %2182  ;;  %1596 = vst [vmem:[%s2573_s17 + $0x5a8] sm:$0xff] %v2181_v59  ;;  %v840_v1 = vadd.f32 -6.9077554, %v584_v57  ;;  %v841_v2 = vadd.f32 -6.9077554, %v585_v58  ;;  %v333_v15 = vld [vmem:[%s2550_s24 + $0x630] sm:$0xff] }
 0x139   : > { %2198 = vpow2.f32 %v1283_v53  ;;  %1597 = vst [vmem:[%s2573_s17 + $0x5b0] sm:$0xff] %v2183_v63  ;;  %v586_v4 = vmul.f32 13.815511, %v330_v60  ;;  %v587_v5 = vmul.f32 13.815511, %v331_v61  ;;  %v334_v16 = vld [vmem:[%s2550_s24 + $0x638] sm:$0xff] }
 0x13a   : > { %v2185_v3 = vpop.eup %2184  ;;  %2200 = vpow2.f32 %v1285_v54  ;;  %v588_v6 = vmul.f32 13.815511, %v332_v62  ;;  %v1287_v8 = vmul.f32 1.442695, %v839_v0  ;;  %v1289_v9 = vmul.f32 1.442695, %v840_v1 }
 0x13b   : > { %v2187_v7 = vpop.eup %2186  ;;  %1598 = vst [vmem:[%s2573_s17 + $0x5b8] sm:$0xff] %v2185_v3  ;;  %v1291_v10 = vmul.f32 1.442695, %v841_v2  ;;  %v842_v12 = vadd.f32 -6.9077554, %v586_v4  ;;  %v335_v17 = vld [vmem:[%s2550_s24 + $0x640] sm:$0xff] }
 0x13c   : > { %v2189_v11 = vpop.eup %2188  ;;  %1599 = vst [vmem:[%s2573_s17 + $0x5c0] sm:$0xff] %v2187_v7  ;;  %v843_v13 = vadd.f32 -6.9077554, %v587_v5  ;;  %v844_v14 = vadd.f32 -6.9077554, %v588_v6  ;;  %2202 = vpow2.f32 %v1287_v8  ;;  %v336_v26 = vld [vmem:[%s2550_s24 + $0x648] sm:$0xff] }
 0x13d   : > { %1600 = vst [vmem:[%s2573_s17 + $0x5c8] sm:$0xff] %v2189_v11  ;;  %2204 = vpow2.f32 %v1289_v9  ;;  %v1293_v18 = vmul.f32 1.442695, %v842_v12  ;;  %v589_v22 = vmul.f32 13.815511, %v333_v15  ;;  %v337_v27 = vld [vmem:[%s2550_s24 + $0x650] sm:$0xff] }
 0x13e   : > { %v1295_v19 = vmul.f32 1.442695, %v843_v13  ;;  %v1297_v20 = vmul.f32 1.442695, %v844_v14  ;;  %2206 = vpow2.f32 %v1291_v10  ;;  %v590_v23 = vmul.f32 13.815511, %v334_v16 }
 0x13f   : > { %v2191_v21 = vpop.eup %2190  ;;  %v591_v24 = vmul.f32 13.815511, %v335_v17  ;;  %2208 = vpow2.f32 %v1293_v18  ;;  %v338_v28 = vld [vmem:[%s2550_s24 + $0x658] sm:$0xff]  ;;  %v845_v30 = vadd.f32 -6.9077554, %v589_v22  ;;  %v339_v45 = vld [vmem:[%s2550_s24 + $0x660] sm:$0xff] }
 0x140   : > { %v2193_v25 = vpop.eup %2192  ;;  %1601 = vst [vmem:[%s2573_s17 + $0x5d0] sm:$0xff] %v2191_v21  ;;  %2210 = vpow2.f32 %v1295_v19  ;;  %v846_v31 = vadd.f32 -6.9077554, %v590_v23  ;;  %v592_v34 = vmul.f32 13.815511, %v336_v26  ;;  %v340_v46 = vld [vmem:[%s2550_s24 + $0x668] sm:$0xff] }
 0x141   : > { %v2195_v29 = vpop.eup %2194  ;;  %1602 = vst [vmem:[%s2573_s17 + $0x5d8] sm:$0xff] %v2193_v25  ;;  %v847_v32 = vadd.f32 -6.9077554, %v591_v24  ;;  %2212 = vpow2.f32 %v1297_v20  ;;  %v593_v35 = vmul.f32 13.815511, %v337_v27  ;;  %v341_v47 = vld [vmem:[%s2550_s24 + $0x670] sm:$0xff] }
 0x142   : > { %v2197_v33 = vpop.eup %2196  ;;  %1603 = vst [vmem:[%s2573_s17 + $0x5e0] sm:$0xff] %v2195_v29  ;;  %v594_v36 = vmul.f32 13.815511, %v338_v28  ;;  %v1299_v38 = vmul.f32 1.442695, %v845_v30  ;;  %v342_v56 = vld [vmem:[%s2550_s24 + $0x678] sm:$0xff] }
 0x143   : > { %v2199_v37 = vpop.eup %2198  ;;  %1604 = vst [vmem:[%s2573_s17 + $0x5e8] sm:$0xff] %v2197_v33  ;;  %v1301_v39 = vmul.f32 1.442695, %v846_v31  ;;  %v1303_v40 = vmul.f32 1.442695, %v847_v32  ;;  %v343_v57 = vld [vmem:[%s2550_s24 + $0x680] sm:$0xff] }
 0x144   : > { %v2201_v41 = vpop.eup %2200  ;;  %1605 = vst [vmem:[%s2573_s17 + $0x5f0] sm:$0xff] %v2199_v37  ;;  %v848_v42 = vadd.f32 -6.9077554, %v592_v34  ;;  %v849_v43 = vadd.f32 -6.9077554, %v593_v35  ;;  %2214 = vpow2.f32 %v1299_v38  ;;  %v344_v58 = vld [vmem:[%s2550_s24 + $0x688] sm:$0xff] }
 0x145   : > { %v850_v44 = vadd.f32 -6.9077554, %v594_v36  ;;  %1606 = vst [vmem:[%s2573_s17 + $0x5f8] sm:$0xff] %v2201_v41  ;;  %2216 = vpow2.f32 %v1301_v39  ;;  %v595_v52 = vmul.f32 13.815511, %v339_v45  ;;  %v345_v11 = vld [vmem:[%s2550_s24 + $0x690] sm:$0xff] }
 0x146   : > { %v1305_v48 = vmul.f32 1.442695, %v848_v42  ;;  %v1307_v49 = vmul.f32 1.442695, %v849_v43  ;;  %v2203_v51 = vpop.eup %2202  ;;  %2218 = vpow2.f32 %v1303_v40  ;;  %v596_v53 = vmul.f32 13.815511, %v340_v46 }
 0x147   : > { %v1309_v50 = vmul.f32 1.442695, %v850_v44  ;;  %v597_v54 = vmul.f32 13.815511, %v341_v47  ;;  %v2205_v55 = vpop.eup %2204  ;;  %1607 = vst [vmem:[%s2573_s17 + $0x600] sm:$0xff] %v2203_v51  ;;  %v346_v12 = vld [vmem:[%s2550_s24 + $0x698] sm:$0xff] }
 0x148   : > { %2220 = vpow2.f32 %v1305_v48  ;;  %v2207_v59 = vpop.eup %2206  ;;  %1608 = vst [vmem:[%s2573_s17 + $0x608] sm:$0xff] %v2205_v55  ;;  %v851_v60 = vadd.f32 -6.9077554, %v595_v52  ;;  %v852_v61 = vadd.f32 -6.9077554, %v596_v53  ;;  %v347_v13 = vld [vmem:[%s2550_s24 + $0x6a0] sm:$0xff] }
 0x149   : > { %2222 = vpow2.f32 %v1307_v49  ;;  %v853_v62 = vadd.f32 -6.9077554, %v597_v54  ;;  %v2209_v63 = vpop.eup %2208  ;;  %1609 = vst [vmem:[%s2573_s17 + $0x610] sm:$0xff] %v2207_v59  ;;  %v598_v0 = vmul.f32 13.815511, %v342_v56  ;;  %v348_v22 = vld [vmem:[%s2550_s24 + $0x6a8] sm:$0xff] }
 0x14a   : > { %2224 = vpow2.f32 %v1309_v50  ;;  %v599_v1 = vmul.f32 13.815511, %v343_v57  ;;  %v600_v2 = vmul.f32 13.815511, %v344_v58  ;;  %v2211_v3 = vpop.eup %2210  ;;  %1610 = vst [vmem:[%s2573_s17 + $0x618] sm:$0xff] %v2209_v63  ;;  %v349_v23 = vld [vmem:[%s2550_s24 + $0x6b0] sm:$0xff] }
 0x14b   : > { %v1311_v4 = vmul.f32 1.442695, %v851_v60  ;;  %v1313_v5 = vmul.f32 1.442695, %v852_v61  ;;  %v1315_v6 = vmul.f32 1.442695, %v853_v62  ;;  %v2213_v7 = vpop.eup %2212 }
 0x14c   : > { %1611 = vst [vmem:[%s2573_s17 + $0x620] sm:$0xff] %v2211_v3  ;;  %v854_v8 = vadd.f32 -6.9077554, %v598_v0  ;;  %v855_v9 = vadd.f32 -6.9077554, %v599_v1  ;;  %1612 = vst [vmem:[%s2573_s17 + $0x628] sm:$0xff] %v2213_v7 }
 0x14d   : > { %v856_v10 = vadd.f32 -6.9077554, %v600_v2  ;;  %2226 = vpow2.f32 %v1311_v4  ;;  %v601_v18 = vmul.f32 13.815511, %v345_v11  ;;  %v602_v19 = vmul.f32 13.815511, %v346_v12 }
 0x14e   : > { %2228 = vpow2.f32 %v1313_v5  ;;  %v1317_v14 = vmul.f32 1.442695, %v854_v8  ;;  %v1319_v15 = vmul.f32 1.442695, %v855_v9  ;;  %v2215_v17 = vpop.eup %2214  ;;  %v603_v20 = vmul.f32 13.815511, %v347_v13 }
 0x14f   : > { %v1321_v16 = vmul.f32 1.442695, %v856_v10  ;;  %2230 = vpow2.f32 %v1315_v6  ;;  %v2217_v21 = vpop.eup %2216  ;;  %1613 = vst [vmem:[%s2573_s17 + $0x630] sm:$0xff] %v2215_v17  ;;  %v350_v24 = vld [vmem:[%s2550_s24 + $0x6b8] sm:$0xff]  ;;  %v857_v26 = vadd.f32 -6.9077554, %v601_v18 }
 0x150   : > { %2232 = vpow2.f32 %v1317_v14  ;;  %v2219_v25 = vpop.eup %2218  ;;  %1614 = vst [vmem:[%s2573_s17 + $0x638] sm:$0xff] %v2217_v21  ;;  %v858_v27 = vadd.f32 -6.9077554, %v602_v19  ;;  %v859_v28 = vadd.f32 -6.9077554, %v603_v20  ;;  %v351_v41 = vld [vmem:[%s2550_s24 + $0x6c0] sm:$0xff] }
 0x151   : > { %2234 = vpow2.f32 %v1319_v15  ;;  %1615 = vst [vmem:[%s2573_s17 + $0x640] sm:$0xff] %v2219_v25  ;;  %v604_v30 = vmul.f32 13.815511, %v348_v22  ;;  %v605_v31 = vmul.f32 13.815511, %v349_v23  ;;  %v352_v42 = vld [vmem:[%s2550_s24 + $0x6c8] sm:$0xff] }
 0x152   : > { %v2221_v29 = vpop.eup %2220  ;;  %2236 = vpow2.f32 %v1321_v16  ;;  %v606_v32 = vmul.f32 13.815511, %v350_v24  ;;  %v1323_v34 = vmul.f32 1.442695, %v857_v26  ;;  %v1325_v35 = vmul.f32 1.442695, %v858_v27 }
 0x153   : > { %v2223_v33 = vpop.eup %2222  ;;  %1616 = vst [vmem:[%s2573_s17 + $0x648] sm:$0xff] %v2221_v29  ;;  %v1327_v36 = vmul.f32 1.442695, %v859_v28  ;;  %v860_v38 = vadd.f32 -6.9077554, %v604_v30  ;;  %v353_v43 = vld [vmem:[%s2550_s24 + $0x6d0] sm:$0xff] }
 0x154   : > { %v2225_v37 = vpop.eup %2224  ;;  %1617 = vst [vmem:[%s2573_s17 + $0x650] sm:$0xff] %v2223_v33  ;;  %v861_v39 = vadd.f32 -6.9077554, %v605_v31  ;;  %v862_v40 = vadd.f32 -6.9077554, %v606_v32  ;;  %2238 = vpow2.f32 %v1323_v34  ;;  %v354_v52 = vld [vmem:[%s2550_s24 + $0x6d8] sm:$0xff] }
 0x155   : > { %1618 = vst [vmem:[%s2573_s17 + $0x658] sm:$0xff] %v2225_v37  ;;  %2240 = vpow2.f32 %v1325_v35  ;;  %v1329_v44 = vmul.f32 1.442695, %v860_v38  ;;  %v607_v48 = vmul.f32 13.815511, %v351_v41  ;;  %v355_v53 = vld [vmem:[%s2550_s24 + $0x6e0] sm:$0xff] }
 0x156   : > { %v1331_v45 = vmul.f32 1.442695, %v861_v39  ;;  %v1333_v46 = vmul.f32 1.442695, %v862_v40  ;;  %2242 = vpow2.f32 %v1327_v36  ;;  %v608_v49 = vmul.f32 13.815511, %v352_v42 }
 0x157   : > { %v2227_v47 = vpop.eup %2226  ;;  %v609_v50 = vmul.f32 13.815511, %v353_v43  ;;  %2244 = vpow2.f32 %v1329_v44  ;;  %v356_v54 = vld [vmem:[%s2550_s24 + $0x6e8] sm:$0xff]  ;;  %v863_v56 = vadd.f32 -6.9077554, %v607_v48  ;;  %v357_v7 = vld [vmem:[%s2550_s24 + $0x6f0] sm:$0xff] }
 0x158   : > { %v2229_v51 = vpop.eup %2228  ;;  %1619 = vst [vmem:[%s2573_s17 + $0x660] sm:$0xff] %v2227_v47  ;;  %2246 = vpow2.f32 %v1331_v45  ;;  %v864_v57 = vadd.f32 -6.9077554, %v608_v49  ;;  %v610_v60 = vmul.f32 13.815511, %v354_v52  ;;  %v358_v8 = vld [vmem:[%s2550_s24 + $0x6f8] sm:$0xff] }
 0x159   : > { %v2231_v55 = vpop.eup %2230  ;;  %1620 = vst [vmem:[%s2573_s17 + $0x668] sm:$0xff] %v2229_v51  ;;  %v865_v58 = vadd.f32 -6.9077554, %v609_v50  ;;  %2248 = vpow2.f32 %v1333_v46  ;;  %v611_v61 = vmul.f32 13.815511, %v355_v53  ;;  %v359_v9 = vld [vmem:[%s2550_s24 + $0x700] sm:$0xff] }
 0x15a   : > { %v2233_v59 = vpop.eup %2232  ;;  %1621 = vst [vmem:[%s2573_s17 + $0x670] sm:$0xff] %v2231_v55  ;;  %v612_v62 = vmul.f32 13.815511, %v356_v54  ;;  %v1335_v0 = vmul.f32 1.442695, %v863_v56  ;;  %v360_v18 = vld [vmem:[%s2550_s24 + $0x708] sm:$0xff] }
 0x15b   : > { %v2235_v63 = vpop.eup %2234  ;;  %1622 = vst [vmem:[%s2573_s17 + $0x678] sm:$0xff] %v2233_v59  ;;  %v1337_v1 = vmul.f32 1.442695, %v864_v57  ;;  %v1339_v2 = vmul.f32 1.442695, %v865_v58  ;;  %v361_v19 = vld [vmem:[%s2550_s24 + $0x710] sm:$0xff] }
 0x15c   : > { %v2237_v3 = vpop.eup %2236  ;;  %1623 = vst [vmem:[%s2573_s17 + $0x680] sm:$0xff] %v2235_v63  ;;  %v866_v4 = vadd.f32 -6.9077554, %v610_v60  ;;  %v867_v5 = vadd.f32 -6.9077554, %v611_v61  ;;  %2250 = vpow2.f32 %v1335_v0  ;;  %v362_v20 = vld [vmem:[%s2550_s24 + $0x718] sm:$0xff] }
 0x15d   : > { %v868_v6 = vadd.f32 -6.9077554, %v612_v62  ;;  %1624 = vst [vmem:[%s2573_s17 + $0x688] sm:$0xff] %v2237_v3  ;;  %2252 = vpow2.f32 %v1337_v1  ;;  %v613_v14 = vmul.f32 13.815511, %v357_v7  ;;  %v363_v37 = vld [vmem:[%s2550_s24 + $0x720] sm:$0xff] }
 0x15e   : > { %v1341_v10 = vmul.f32 1.442695, %v866_v4  ;;  %v1343_v11 = vmul.f32 1.442695, %v867_v5  ;;  %v2239_v13 = vpop.eup %2238  ;;  %2254 = vpow2.f32 %v1339_v2  ;;  %v614_v15 = vmul.f32 13.815511, %v358_v8 }
 0x15f   : > { %v1345_v12 = vmul.f32 1.442695, %v868_v6  ;;  %v615_v16 = vmul.f32 13.815511, %v359_v9  ;;  %v2241_v17 = vpop.eup %2240  ;;  %1625 = vst [vmem:[%s2573_s17 + $0x690] sm:$0xff] %v2239_v13  ;;  %v364_v38 = vld [vmem:[%s2550_s24 + $0x728] sm:$0xff] }
 0x160   : > { %2256 = vpow2.f32 %v1341_v10  ;;  %v2243_v21 = vpop.eup %2242  ;;  %1626 = vst [vmem:[%s2573_s17 + $0x698] sm:$0xff] %v2241_v17  ;;  %v869_v22 = vadd.f32 -6.9077554, %v613_v14  ;;  %v870_v23 = vadd.f32 -6.9077554, %v614_v15  ;;  %v365_v39 = vld [vmem:[%s2550_s24 + $0x730] sm:$0xff] }
 0x161   : > { %2258 = vpow2.f32 %v1343_v11  ;;  %v871_v24 = vadd.f32 -6.9077554, %v615_v16  ;;  %v2245_v25 = vpop.eup %2244  ;;  %1627 = vst [vmem:[%s2573_s17 + $0x6a0] sm:$0xff] %v2243_v21  ;;  %v616_v26 = vmul.f32 13.815511, %v360_v18  ;;  %v366_v48 = vld [vmem:[%s2550_s24 + $0x738] sm:$0xff] }
 0x162   : > { %2260 = vpow2.f32 %v1345_v12  ;;  %v617_v27 = vmul.f32 13.815511, %v361_v19  ;;  %v618_v28 = vmul.f32 13.815511, %v362_v20  ;;  %v2247_v29 = vpop.eup %2246  ;;  %1628 = vst [vmem:[%s2573_s17 + $0x6a8] sm:$0xff] %v2245_v25  ;;  %v367_v49 = vld [vmem:[%s2550_s24 + $0x740] sm:$0xff] }
 0x163   : > { %v1347_v30 = vmul.f32 1.442695, %v869_v22  ;;  %v1349_v31 = vmul.f32 1.442695, %v870_v23  ;;  %v1351_v32 = vmul.f32 1.442695, %v871_v24  ;;  %v2249_v33 = vpop.eup %2248 }
 0x164   : > { %1629 = vst [vmem:[%s2573_s17 + $0x6b0] sm:$0xff] %v2247_v29  ;;  %v872_v34 = vadd.f32 -6.9077554, %v616_v26  ;;  %v873_v35 = vadd.f32 -6.9077554, %v617_v27  ;;  %1630 = vst [vmem:[%s2573_s17 + $0x6b8] sm:$0xff] %v2249_v33 }
 0x165   : > { %v874_v36 = vadd.f32 -6.9077554, %v618_v28  ;;  %2262 = vpow2.f32 %v1347_v30  ;;  %v619_v44 = vmul.f32 13.815511, %v363_v37  ;;  %v620_v45 = vmul.f32 13.815511, %v364_v38 }
 0x166   : > { %2264 = vpow2.f32 %v1349_v31  ;;  %v1353_v40 = vmul.f32 1.442695, %v872_v34  ;;  %v1355_v41 = vmul.f32 1.442695, %v873_v35  ;;  %v2251_v43 = vpop.eup %2250  ;;  %v621_v46 = vmul.f32 13.815511, %v365_v39 }
 0x167   : > { %v1357_v42 = vmul.f32 1.442695, %v874_v36  ;;  %2266 = vpow2.f32 %v1351_v32  ;;  %v2253_v47 = vpop.eup %2252  ;;  %1631 = vst [vmem:[%s2573_s17 + $0x6c0] sm:$0xff] %v2251_v43  ;;  %v368_v50 = vld [vmem:[%s2550_s24 + $0x748] sm:$0xff]  ;;  %v875_v52 = vadd.f32 -6.9077554, %v619_v44 }
 0x168   : > { %2268 = vpow2.f32 %v1353_v40  ;;  %v2255_v51 = vpop.eup %2254  ;;  %1632 = vst [vmem:[%s2573_s17 + $0x6c8] sm:$0xff] %v2253_v47  ;;  %v876_v53 = vadd.f32 -6.9077554, %v620_v45  ;;  %v877_v54 = vadd.f32 -6.9077554, %v621_v46  ;;  %v369_v3 = vld [vmem:[%s2550_s24 + $0x750] sm:$0xff] }
 0x169   : > { %2270 = vpow2.f32 %v1355_v41  ;;  %1633 = vst [vmem:[%s2573_s17 + $0x6d0] sm:$0xff] %v2255_v51  ;;  %v622_v56 = vmul.f32 13.815511, %v366_v48  ;;  %v623_v57 = vmul.f32 13.815511, %v367_v49  ;;  %v370_v4 = vld [vmem:[%s2550_s24 + $0x758] sm:$0xff] }
 0x16a   : > { %v2257_v55 = vpop.eup %2256  ;;  %2272 = vpow2.f32 %v1357_v42  ;;  %v624_v58 = vmul.f32 13.815511, %v368_v50  ;;  %v1359_v60 = vmul.f32 1.442695, %v875_v52  ;;  %v1361_v61 = vmul.f32 1.442695, %v876_v53 }
 0x16b   : > { %v2259_v59 = vpop.eup %2258  ;;  %1634 = vst [vmem:[%s2573_s17 + $0x6d8] sm:$0xff] %v2257_v55  ;;  %v1363_v62 = vmul.f32 1.442695, %v877_v54  ;;  %v878_v0 = vadd.f32 -6.9077554, %v622_v56  ;;  %v371_v5 = vld [vmem:[%s2550_s24 + $0x760] sm:$0xff] }
 0x16c   : > { %v2261_v63 = vpop.eup %2260  ;;  %1635 = vst [vmem:[%s2573_s17 + $0x6e0] sm:$0xff] %v2259_v59  ;;  %v879_v1 = vadd.f32 -6.9077554, %v623_v57  ;;  %v880_v2 = vadd.f32 -6.9077554, %v624_v58  ;;  %2274 = vpow2.f32 %v1359_v60  ;;  %v372_v14 = vld [vmem:[%s2550_s24 + $0x768] sm:$0xff] }
 0x16d   : > { %1636 = vst [vmem:[%s2573_s17 + $0x6e8] sm:$0xff] %v2261_v63  ;;  %2276 = vpow2.f32 %v1361_v61  ;;  %v1365_v6 = vmul.f32 1.442695, %v878_v0  ;;  %v625_v10 = vmul.f32 13.815511, %v369_v3  ;;  %v373_v15 = vld [vmem:[%s2550_s24 + $0x770] sm:$0xff] }
 0x16e   : > { %v1367_v7 = vmul.f32 1.442695, %v879_v1  ;;  %v1369_v8 = vmul.f32 1.442695, %v880_v2  ;;  %2278 = vpow2.f32 %v1363_v62  ;;  %v626_v11 = vmul.f32 13.815511, %v370_v4 }
 0x16f   : > { %v2263_v9 = vpop.eup %2262  ;;  %v627_v12 = vmul.f32 13.815511, %v371_v5  ;;  %2280 = vpow2.f32 %v1365_v6  ;;  %v374_v16 = vld [vmem:[%s2550_s24 + $0x778] sm:$0xff]  ;;  %v881_v18 = vadd.f32 -6.9077554, %v625_v10  ;;  %v375_v33 = vld [vmem:[%s2550_s24 + $0x780] sm:$0xff] }
 0x170   : > { %v2265_v13 = vpop.eup %2264  ;;  %1637 = vst [vmem:[%s2573_s17 + $0x6f0] sm:$0xff] %v2263_v9  ;;  %2282 = vpow2.f32 %v1367_v7  ;;  %v882_v19 = vadd.f32 -6.9077554, %v626_v11  ;;  %v628_v22 = vmul.f32 13.815511, %v372_v14  ;;  %v376_v34 = vld [vmem:[%s2550_s24 + $0x788] sm:$0xff] }
 0x171   : > { %v2267_v17 = vpop.eup %2266  ;;  %1638 = vst [vmem:[%s2573_s17 + $0x6f8] sm:$0xff] %v2265_v13  ;;  %v883_v20 = vadd.f32 -6.9077554, %v627_v12  ;;  %2284 = vpow2.f32 %v1369_v8  ;;  %v629_v23 = vmul.f32 13.815511, %v373_v15  ;;  %v377_v35 = vld [vmem:[%s2550_s24 + $0x790] sm:$0xff] }
 0x172   : > { %v2269_v21 = vpop.eup %2268  ;;  %1639 = vst [vmem:[%s2573_s17 + $0x700] sm:$0xff] %v2267_v17  ;;  %v630_v24 = vmul.f32 13.815511, %v374_v16  ;;  %v1371_v26 = vmul.f32 1.442695, %v881_v18  ;;  %v378_v44 = vld [vmem:[%s2550_s24 + $0x798] sm:$0xff] }
 0x173   : > { %v2271_v25 = vpop.eup %2270  ;;  %1640 = vst [vmem:[%s2573_s17 + $0x708] sm:$0xff] %v2269_v21  ;;  %v1373_v27 = vmul.f32 1.442695, %v882_v19  ;;  %v1375_v28 = vmul.f32 1.442695, %v883_v20  ;;  %v379_v45 = vld [vmem:[%s2550_s24 + $0x7a0] sm:$0xff] }
 0x174   : > { %v2273_v29 = vpop.eup %2272  ;;  %1641 = vst [vmem:[%s2573_s17 + $0x710] sm:$0xff] %v2271_v25  ;;  %v884_v30 = vadd.f32 -6.9077554, %v628_v22  ;;  %v885_v31 = vadd.f32 -6.9077554, %v629_v23  ;;  %2286 = vpow2.f32 %v1371_v26  ;;  %v380_v46 = vld [vmem:[%s2550_s24 + $0x7a8] sm:$0xff] }
 0x175   : > { %v886_v32 = vadd.f32 -6.9077554, %v630_v24  ;;  %1642 = vst [vmem:[%s2573_s17 + $0x718] sm:$0xff] %v2273_v29  ;;  %2288 = vpow2.f32 %v1373_v27  ;;  %v631_v40 = vmul.f32 13.815511, %v375_v33  ;;  %v381_v63 = vld [vmem:[%s2550_s24 + $0x7b0] sm:$0xff] }
 0x176   : > { %v1377_v36 = vmul.f32 1.442695, %v884_v30  ;;  %v1379_v37 = vmul.f32 1.442695, %v885_v31  ;;  %v2275_v39 = vpop.eup %2274  ;;  %2290 = vpow2.f32 %v1375_v28  ;;  %v632_v41 = vmul.f32 13.815511, %v376_v34 }
 0x177   : > { %v1381_v38 = vmul.f32 1.442695, %v886_v32  ;;  %v633_v42 = vmul.f32 13.815511, %v377_v35  ;;  %v2277_v43 = vpop.eup %2276  ;;  %1643 = vst [vmem:[%s2573_s17 + $0x720] sm:$0xff] %v2275_v39  ;;  %v382_v0 = vld [vmem:[%s2550_s24 + $0x7b8] sm:$0xff] }
 0x178   : > { %2292 = vpow2.f32 %v1377_v36  ;;  %v2279_v47 = vpop.eup %2278  ;;  %1644 = vst [vmem:[%s2573_s17 + $0x728] sm:$0xff] %v2277_v43  ;;  %v887_v48 = vadd.f32 -6.9077554, %v631_v40  ;;  %v888_v49 = vadd.f32 -6.9077554, %v632_v41  ;;  %v383_v1 = vld [vmem:[%s2550_s24 + $0x7c0] sm:$0xff] }
 0x179   : > { %2294 = vpow2.f32 %v1379_v37  ;;  %v889_v50 = vadd.f32 -6.9077554, %v633_v42  ;;  %v2281_v51 = vpop.eup %2280  ;;  %1645 = vst [vmem:[%s2573_s17 + $0x730] sm:$0xff] %v2279_v47  ;;  %v634_v52 = vmul.f32 13.815511, %v378_v44  ;;  %v384_v10 = vld [vmem:[%s2550_s24 + $0x7c8] sm:$0xff] }
 0x17a   : > { %2296 = vpow2.f32 %v1381_v38  ;;  %v635_v53 = vmul.f32 13.815511, %v379_v45  ;;  %v636_v54 = vmul.f32 13.815511, %v380_v46  ;;  %v2283_v55 = vpop.eup %2282  ;;  %1646 = vst [vmem:[%s2573_s17 + $0x738] sm:$0xff] %v2281_v51  ;;  %v385_v11 = vld [vmem:[%s2550_s24 + $0x7d0] sm:$0xff] }
 0x17b   : > { %v1383_v56 = vmul.f32 1.442695, %v887_v48  ;;  %v1385_v57 = vmul.f32 1.442695, %v888_v49  ;;  %v1387_v58 = vmul.f32 1.442695, %v889_v50  ;;  %v2285_v59 = vpop.eup %2284 }
 0x17c   : > { %1647 = vst [vmem:[%s2573_s17 + $0x740] sm:$0xff] %v2283_v55  ;;  %v890_v60 = vadd.f32 -6.9077554, %v634_v52  ;;  %v891_v61 = vadd.f32 -6.9077554, %v635_v53  ;;  %1648 = vst [vmem:[%s2573_s17 + $0x748] sm:$0xff] %v2285_v59 }
 0x17d   : > { %v892_v62 = vadd.f32 -6.9077554, %v636_v54  ;;  %2298 = vpow2.f32 %v1383_v56  ;;  %v637_v6 = vmul.f32 13.815511, %v381_v63  ;;  %v638_v7 = vmul.f32 13.815511, %v382_v0 }
 0x17e   : > { %2300 = vpow2.f32 %v1385_v57  ;;  %v1389_v2 = vmul.f32 1.442695, %v890_v60  ;;  %v1391_v3 = vmul.f32 1.442695, %v891_v61  ;;  %v2287_v5 = vpop.eup %2286  ;;  %v639_v8 = vmul.f32 13.815511, %v383_v1 }
 0x17f   : > { %v1393_v4 = vmul.f32 1.442695, %v892_v62  ;;  %2302 = vpow2.f32 %v1387_v58  ;;  %v2289_v9 = vpop.eup %2288  ;;  %1649 = vst [vmem:[%s2573_s17 + $0x750] sm:$0xff] %v2287_v5  ;;  %v386_v12 = vld [vmem:[%s2550_s24 + $0x7d8] sm:$0xff]  ;;  %v893_v14 = vadd.f32 -6.9077554, %v637_v6 }
 0x180   : > { %2304 = vpow2.f32 %v1389_v2  ;;  %v2291_v13 = vpop.eup %2290  ;;  %1650 = vst [vmem:[%s2573_s17 + $0x758] sm:$0xff] %v2289_v9  ;;  %v894_v15 = vadd.f32 -6.9077554, %v638_v7  ;;  %v895_v16 = vadd.f32 -6.9077554, %v639_v8  ;;  %v387_v29 = vld [vmem:[%s2550_s24 + $0x7e0] sm:$0xff] }
 0x181   : > { %2306 = vpow2.f32 %v1391_v3  ;;  %1651 = vst [vmem:[%s2573_s17 + $0x760] sm:$0xff] %v2291_v13  ;;  %v640_v18 = vmul.f32 13.815511, %v384_v10  ;;  %v641_v19 = vmul.f32 13.815511, %v385_v11  ;;  %v388_v30 = vld [vmem:[%s2550_s24 + $0x7e8] sm:$0xff] }
 0x182   : > { %v2293_v17 = vpop.eup %2292  ;;  %2308 = vpow2.f32 %v1393_v4  ;;  %v642_v20 = vmul.f32 13.815511, %v386_v12  ;;  %v1395_v22 = vmul.f32 1.442695, %v893_v14  ;;  %v1397_v23 = vmul.f32 1.442695, %v894_v15 }
 0x183   : > { %v2295_v21 = vpop.eup %2294  ;;  %1652 = vst [vmem:[%s2573_s17 + $0x768] sm:$0xff] %v2293_v17  ;;  %v1399_v24 = vmul.f32 1.442695, %v895_v16  ;;  %v896_v26 = vadd.f32 -6.9077554, %v640_v18  ;;  %v389_v31 = vld [vmem:[%s2550_s24 + $0x7f0] sm:$0xff] }
 0x184   : > { %v2297_v25 = vpop.eup %2296  ;;  %1653 = vst [vmem:[%s2573_s17 + $0x770] sm:$0xff] %v2295_v21  ;;  %v897_v27 = vadd.f32 -6.9077554, %v641_v19  ;;  %v898_v28 = vadd.f32 -6.9077554, %v642_v20  ;;  %2310 = vpow2.f32 %v1395_v22  ;;  %v390_v40 = vld [vmem:[%s2550_s24 + $0x7f8] sm:$0xff] }
 0x185   : > { %1654 = vst [vmem:[%s2573_s17 + $0x778] sm:$0xff] %v2297_v25  ;;  %2312 = vpow2.f32 %v1397_v23  ;;  %v1401_v32 = vmul.f32 1.442695, %v896_v26  ;;  %v643_v36 = vmul.f32 13.815511, %v387_v29  ;;  %s1686_s26 = sshll.u32 %s2573_s17, 4  ;;  %s3077_s26 = int_to_ptr.vmem [resolvable:$true] %s1686_s26 }
 0x186   : > { %v1403_v33 = vmul.f32 1.442695, %v897_v27  ;;  %v1405_v34 = vmul.f32 1.442695, %v898_v28  ;;  %2314 = vpow2.f32 %v1399_v24  ;;  %v644_v37 = vmul.f32 13.815511, %v388_v30 }
 0x187   : > { %v2299_v35 = vpop.eup %2298  ;;  %v645_v38 = vmul.f32 13.815511, %v389_v31  ;;  %2316 = vpow2.f32 %v1401_v32  ;;  %v899_v42 = vadd.f32 -6.9077554, %v643_v36  ;;  %v646_v46 = vmul.f32 13.815511, %v390_v40 }
 0x188   : > { %v2301_v39 = vpop.eup %2300  ;;  %1655 = vst [vmem:[%s2573_s17 + $0x780] sm:$0xff] %v2299_v35  ;;  %2318 = vpow2.f32 %v1403_v33  ;;  %v900_v43 = vadd.f32 -6.9077554, %v644_v37  ;;  %s1672_s10 = scalar_lea.sflag [#allocation4], %s2544_s21  ;;  %s2360_s30 = scalar_lea.vmem %s3077_s26, 32768 }
 0x189   : > { %v2303_v41 = vpop.eup %2302  ;;  %1656 = vst [vmem:[%s2573_s17 + $0x788] sm:$0xff] %v2301_v39  ;;  %v901_v44 = vadd.f32 -6.9077554, %v645_v38  ;;  %2320 = vpow2.f32 %v1405_v34  ;;  %v1407_v48 = vmul.f32 1.442695, %v899_v42  ;;  %p2361_p6 = scmp.ne.s32.totalorder %s3077_s26, %s2360_s30  ;;  %p3130_p10 = scmp.ne.s32.totalorder %s3125_s18, 0 }
 0x18a   : > { %v2305_v45 = vpop.eup %2304  ;;  %1657 = vst [vmem:[%s2573_s17 + $0x790] sm:$0xff] %v2303_v41  ;;  %v1409_v49 = vmul.f32 1.442695, %v900_v43  ;;  %v902_v52 = vadd.f32 -6.9077554, %v646_v46  ;;  %s2429_s2 = smov [#allocation5]  }
 0x18b   : > { %v2307_v47 = vpop.eup %2306  ;;  %1658 = vst [vmem:[%s2573_s17 + $0x798] sm:$0xff] %v2305_v45  ;;  %v1411_v50 = vmul.f32 1.442695, %v901_v44  ;;  %2322 = vpow2.f32 %v1407_v48  ;;  %p2362_p11 = pnand %p2361_p6, %p3130_p10  ;;  %s2364_s3 = sshll.u32 %s2429_s2, 4  ;;  %s2365_s3 = int_to_ptr.vmem [resolvable:$false] %s2364_s3 }
 0x18c   : > { %v2309_v51 = vpop.eup %2308  ;;  %1659 = vst [vmem:[%s2573_s17 + $0x7a0] sm:$0xff] %v2307_v47  ;;  %2324 = vpow2.f32 %v1409_v49  ;;  %v1413_v53 = vmul.f32 1.442695, %v902_v52  ;;  %s2366_s4 = scalar_lea.vmem %s2365_s3, 65536  ;;  %p2367_p4 = scmp.lt.s32.totalorder %s3077_s26, %s2365_s3 }
 0x18d   : > { %1660 = vst [vmem:[%s2573_s17 + $0x7a8] sm:$0xff] %v2309_v51  ;;  %2326 = vpow2.f32 %v1411_v50  ;;  %p2363_p12 = pneg %p2362_p11  ;;  %p2368_p9 = scmp.lt.s32.totalorder %s2366_s4, %s2360_s30 }
 0x18e   : > { %v2311_v54 = vpop.eup %2310  ;;  %2328 = vpow2.f32 %v1413_v53 }
 0x18f   : > { %v2313_v55 = vpop.eup %2312  ;;  %1661 = vst [vmem:[%s2573_s17 + $0x7b0] sm:$0xff] %v2311_v54  ;;  %p2369_p1 = por %p2368_p9, %p2367_p4 }
 0x190   : > { %v2315_v56 = vpop.eup %2314  ;;  %1662 = vst [vmem:[%s2573_s17 + $0x7b8] sm:$0xff] %v2313_v55 }
 0x191   : > { %v2317_v57 = vpop.eup %2316  ;;  %1663 = vst [vmem:[%s2573_s17 + $0x7c0] sm:$0xff] %v2315_v56  ;;  %p2370_p3 = pnand %p2369_p1, %p2363_p12 }
 0x192   : > { %v2319_v58 = vpop.eup %2318  ;;  %1664 = vst [vmem:[%s2573_s17 + $0x7c8] sm:$0xff] %v2317_v57 }
 0x193   : > { %v2321_v59 = vpop.eup %2320  ;;  %1665 = vst [vmem:[%s2573_s17 + $0x7d0] sm:$0xff] %v2319_v58 }
 0x194   : > { %1666 = vst [vmem:[%s2573_s17 + $0x7d8] sm:$0xff] %v2321_v59 }
 0x195   : > { %v2323_v60 = vpop.eup %2322 }
 0x196   : > { %v2325_v61 = vpop.eup %2324  ;;  %1667 = vst [vmem:[%s2573_s17 + $0x7e0] sm:$0xff] %v2323_v60 }
 0x197   : > { %v2327_v62 = vpop.eup %2326  ;;  %1668 = vst [vmem:[%s2573_s17 + $0x7e8] sm:$0xff] %v2325_v61 }
 0x198   : > { %v2329_v63 = vpop.eup %2328  ;;  %1669 = vst [vmem:[%s2573_s17 + $0x7f0] sm:$0xff] %v2327_v62 }
 0x199   : > { %1670 = vst [vmem:[%s2573_s17 + $0x7f8] sm:$0xff] %v2329_v63 }
 0x19a   : > { %2373 = shalt.err (!%p2370_p3)
}
 0x19b   : > { %s2374_s5 = scalar_lea.hbm %s3075_s29, 32768  ;;  %s2378_s14 = scalar_lea.hbm %s3121_s1, 131072 }
 0x19c   : > { %p2375_p5 = scmp.ne.s32.totalorder %s3075_s29, %s2374_s5  ;;  %p2379_p13 = scmp.lt.u32.totalorder %s3075_s29, %s3121_s1 }
 0x19d   : > { %p2380_p0 = scmp.lt.u32.totalorder %s2378_s14, %s2374_s5  ;;  %p2382_p6 = scmp.lt.u32.totalorder %s2374_s5, %s3075_s29 }
 0x19e   : > { %p2376_p7 = pnand %p2375_p5, %p3130_p10 }
 0x19f   : > { %p2381_p2 = por %p2380_p0, %p2379_p13 }
 0x1a0   : > { %p2377_p8 = pneg %p2376_p7 }
 0x1a1   : > { %p2383_p11 = por %p2382_p6, %p2381_p2 }
 0x1a3   : > { %p2384_p12 = pnand %p2383_p11, %p2377_p8 }
 0x1a5   : > { %2387 = shalt.err (!%p2384_p12)
}
 0x1a6   : > { %1774 = dma.vmem_to_hbm [thread:$0]  (%p3130_p10), %s3077_s26, 32768, %s3075_s29, %s1672_s10  }
 0x1a7 PF: > { %p1785_p4 = scmp.ge.s32.totalorder %s2426_s9, 2  ;;  %s1698_s21 = sand.u32 1, %s2414_s6  }
 0x1a8   : > { %p3131_p9 = scmp.ne.s32.totalorder %s3126_s19, 0  ;;  %s1699_s22 = scalar_lea.sflag [#allocation4], %s1698_s21 }
 0x1aa   : > { %p1781_p1 = pnand %p1785_p4, %p3131_p9 }
 0x1ac   : > { %2409 = dma.done.wait (!%p1781_p1), %s1699_s22, 32768  }
 0x1ad   : > { %2411 = vsyncadd (!%p1781_p1), %s1699_s22, 4294934528  ;;  %p14_p3 = scmp.ge.s32.totalorder %s2465_s12, 6   ;;  %s3132_s6 = smov %s2418_s7 }
 0x1ae   : > { %s3133_s7 = smov %s2422_s8  ;;  %s3134_s8 = smov %s2477_s15 }
 0x1af   : > { %s3135_s9 = smov %s2465_s12  ;;  %16 = sbr.rel (!%p14_p3) target bundleno = 5 (0x5), region = 69 }
 0x1b6   :  { %1704 = vsyncpa [#allocation3], 1 }
 0x1b7   :  { %1706 = vsyncpa [#allocation3 + $0x1], 1 }
 0x1b8   :  { %1707 = vsyncpa [#allocation4], 1 }
 0x1b9   :  { %1709 = vsyncpa [#allocation4 + $0x1], 1 }

</bundles_post_ra>
